<compile_context>
chip_gen: v7x
topology: tpu7x:2x2x1
jax: 0.10.0
libtpu: 0.0.40
codegen_flags: <defaults>
</compile_context>

<pallas_src>
import functools

import numpy as np
import jax
import jax.numpy as jnp
from jax import lax
from jax.experimental import pallas as pl
from jax.experimental.pallas import tpu as pltpu


# ----------------------------------------------------------------------------
# Constant helpers (built once at trace time, stay VMEM-resident in the kernel)
# ----------------------------------------------------------------------------
def _banded_conv_matrices(w_hwio, W, stride):
    """Fold the x-direction of a 3x3 'same' conv into banded matmul operands.

    Returns A with A[ky] of shape (W*Cin, W*Cout) such that, for feature maps
    laid out with lanes = x*Cin + ci,
        (row_shift_by_dy(feat) @ A[ky])[..., xout*Cout + co]
          = sum_{dx, ci} w[ky, dx+1, ci, co] * feat[..., (xout + stride*dx)*Cin + ci]
    Out-of-range x taps are absent from the band (== zero padding in x); for
    stride == 2 only even xout columns are populated (conv on the pooled grid,
    evaluated in the un-compacted full-resolution layout).
    """
    kh, kw, cin, cout = w_hwio.shape
    m = np.zeros((kw, W, W), np.float32)
    for k, dx in enumerate((-1, 0, 1)):
        for xout in range(0, W, stride):
            xin = xout + stride * dx
            if 0 <= xin < W:
                m[k, xin, xout] = 1.0
    a = jnp.einsum("kio,dkab->diaob", jnp.asarray(m), w_hwio.astype(jnp.float32))
    return a.reshape(kh, W * cin, W * cout).astype(jnp.bfloat16)


def _row_select(block_b, H, Ho):
    """(Ho*B, B*H) 0/1 matrix picking the stride-4 rows (b, (H//Ho)*yf)."""
    step = H // Ho
    sel = np.zeros((Ho * block_b, block_b * H), np.float32)
    for yf in range(Ho):
        for b in range(block_b):
            sel[yf * block_b + b, b * H + step * yf] = 1.0
    return jnp.asarray(sel)


def _col_select(W, Wo, c):
    """(W*c, Wo*c) 0/1 matrix picking the stride-4 lane groups x = (W//Wo)*xf."""
    step = W // Wo
    sel = np.zeros((W * c, Wo * c), np.float32)
    for xf in range(Wo):
        for ch in range(c):
            sel[step * xf * c + ch, xf * c + ch] = 1.0
    return jnp.asarray(sel)


# ----------------------------------------------------------------------------
# Fused encoder kernel (one grid step = block_b images)
# ----------------------------------------------------------------------------
def _encoder_kernel(x_ref, a1_ref, a2_ref, b1_ref, b2_ref, lsel_ref, rsel_ref,
                    o_ref, *, H, C1, C2, block_b, Ho):
    R = block_b * H                                            # rows = (image, y)
    yrow = lax.broadcasted_iota(jnp.int32, (R, 1), 0) % H      # per-image y of each row

    def shift_rows(a, s):
        # result[r, :] = a[r + s, :], zero-filled at the block edges.
        if s == 0:
            return a
        pad = jnp.zeros((abs(s), a.shape[1]), a.dtype)
        if s > 0:
            return jnp.concatenate([a[s:, :], pad], axis=0)
        return jnp.concatenate([pad, a[:s, :]], axis=0)

    def shift_lanes(a, t):
        # result[:, j] = a[:, j + t], zero-filled on the right.
        pad = jnp.zeros((a.shape[0], t), a.dtype)
        return jnp.concatenate([a[:, t:], pad], axis=1)

    def conv3x3(inp, a_ref, step):
        # 3x3 'same' conv = 3 row shifts (dy) + 3 banded bf16 matmuls (dx, ci),
        # accumulated in f32.  `step` is 1 (full grid) or 2 (pooled grid).
        acc = jnp.zeros((R, a_ref.shape[-1]), jnp.float32)
        for t, dy in enumerate((-1, 0, 1)):
            s = dy * step
            src = shift_rows(inp, s)
            if s != 0:
                # zero rows whose source crossed an image boundary (== y padding)
                ok = (yrow + s >= 0) & (yrow + s < H)
                src = jnp.where(ok, src, 0.0)
            acc = acc + jnp.dot(src.astype(jnp.bfloat16), a_ref[t],
                                preferred_element_type=jnp.float32)
        return acc

    x = x_ref[...]                                             # (R, W*Cin) f32

    # conv1 -> bias -> ReLU                                     (R, W*C1)
    h = jnp.maximum(conv3x3(x, a1_ref, 1) + b1_ref[...], 0.0)

    # pool1: 2x2/2 max kept at full resolution (valid at even y / even x).
    h = jnp.maximum(h, shift_rows(h, 1))
    h = jnp.maximum(h, shift_lanes(h, C1))

    # conv2 on the pooled (stride-2) grid -> bias -> ReLU        (R, W*C2)
    g = jnp.maximum(conv3x3(h, a2_ref, 2) + b2_ref[...], 0.0)

    # pool2 (valid at y % 4 == 0 / x % 4 == 0).
    g = jnp.maximum(g, shift_rows(g, 2))
    g = jnp.maximum(g, shift_lanes(g, 2 * C2))

    # Compact to one lane-dense 128-wide row per image (exact f32 0/1 matmuls).
    gc = jnp.dot(g, rsel_ref[...], preferred_element_type=jnp.float32)      # (R, Wo*C2)
    rows = jnp.dot(lsel_ref[...], gc, preferred_element_type=jnp.float32)   # (Ho*B, Wo*C2)
    o_ref[0] = jnp.concatenate(
        [rows[yf * block_b:(yf + 1) * block_b, :] for yf in range(Ho)], axis=1)


# ----------------------------------------------------------------------------
# Encoder forward (matches the PyTorch module's forward)
# ----------------------------------------------------------------------------
def encoder_forward(x_nchw, params, *, block_b=8):
    w1, b1, w2, b2 = params                      # w: HWIO (3, 3, Cin, Cout)
    N, Cin, H, W = x_nchw.shape
    C1, C2 = w1.shape[-1], w2.shape[-1]
    assert H % 4 == 0 and W % 4 == 0, "two 2x2/2 pools need H, W % 4 == 0"
    block_b = min(block_b, N)
    assert N % block_b == 0, "batch must be divisible by block_b"
    Ho, Wo = H // 4, W // 4
    G = N // block_b

    # Raw image bytes only (no HBM im2col): NCHW -> NHWC -> rows=(n,y), lanes=(x,ci).
    x = jnp.transpose(x_nchw, (0, 2, 3, 1)).astype(jnp.float32).reshape(N * H, W * Cin)

    a1 = _banded_conv_matrices(w1, W, 1)          # (3, W*Cin, W*C1) bf16
    a2 = _banded_conv_matrices(w2, W, 2)          # (3, W*C1,  W*C2) bf16
    b1t = jnp.tile(b1.astype(jnp.float32), W).reshape(1, W * C1)
    b2t = jnp.tile(b2.astype(jnp.float32), W).reshape(1, W * C2)
    lsel = _row_select(block_b, H, Ho)            # (Ho*B, B*H)   f32 0/1
    rsel = _col_select(W, Wo, C2)                 # (W*C2, Wo*C2) f32 0/1

    kernel = functools.partial(_encoder_kernel, H=H, C1=C1, C2=C2,
                               block_b=block_b, Ho=Ho)
    out = pl.pallas_call(
        kernel,
        out_shape=jax.ShapeDtypeStruct((G, block_b, Ho * Wo * C2), jnp.float32),
        grid=(G,),
        in_specs=[
            pl.BlockSpec((block_b * H, W * Cin), lambda g: (g, 0)),
            pl.BlockSpec(a1.shape, lambda g: (0, 0, 0)),
            pl.BlockSpec(a2.shape, lambda g: (0, 0, 0)),
            pl.BlockSpec(b1t.shape, lambda g: (0, 0)),
            pl.BlockSpec(b2t.shape, lambda g: (0, 0)),
            pl.BlockSpec(lsel.shape, lambda g: (0, 0)),
            pl.BlockSpec(rsel.shape, lambda g: (0, 0)),
        ],
        out_specs=pl.BlockSpec((1, block_b, Ho * Wo * C2), lambda g: (g, 0, 0)),
        compiler_params=pltpu.CompilerParams(
            dimension_semantics=("parallel",)),
    )(x, a1, a2, b1t, b2t, lsel, rsel)

    # (G, B, Ho*Wo*C2) -> (N, C2, Ho, Wo): tiny wrapper-side layout fixup.
    return out.reshape(N, Ho, Wo, C2).transpose(0, 3, 1, 2)


# ----------------------------------------------------------------------------
# Parameters (torch-shaped then converted to HWIO) and pure-JAX reference
# ----------------------------------------------------------------------------
def init_params(key, latent_channel_dim):
    k1, k2, k3, k4 = jax.random.split(key, 4)
    w1_t = jax.random.normal(k1, (16, 3, 3, 3), jnp.float32) / jnp.sqrt(3.0 * 9.0)
    b1 = jax.random.normal(k2, (16,), jnp.float32) * 0.05
    w2_t = jax.random.normal(k3, (latent_channel_dim, 16, 3, 3), jnp.float32) / jnp.sqrt(16.0 * 9.0)
    b2 = jax.random.normal(k4, (latent_channel_dim,), jnp.float32) * 0.05
    w1 = jnp.transpose(w1_t, (2, 3, 1, 0))       # (kH, kW, Cin, Cout)
    w2 = jnp.transpose(w2_t, (2, 3, 1, 0))
    return w1, b1, w2, b2


def reference_forward(x_nchw, params):
    w1, b1, w2, b2 = params

    def conv(x, w, b):
        y = lax.conv_general_dilated(
            x, w, window_strides=(1, 1), padding="SAME",
            dimension_numbers=("NCHW", "HWIO", "NCHW"),
            precision=lax.Precision.HIGHEST)
        return jax.nn.relu(y + b[None, :, None, None])

    def pool(x):
        return lax.reduce_window(x, -jnp.inf, lax.max,
                                 (1, 1, 2, 2), (1, 1, 2, 2), "VALID")

    h = pool(conv(x_nchw, w1, b1))
    h = pool(conv(h, w2, b2))
    return h


if __name__ == "__main__":
    latent_channel_dim = 8
    key = jax.random.PRNGKey(0)
    kx, kp = jax.random.split(key)

    # small CIFAR-like input, NCHW like the PyTorch module (Cin must be 3).
    # N=16 with block_b=8 keeps a 2-step "parallel" grid (both v7x TensorCores busy).
    x = jax.random.normal(kx, (16, 3, 16, 16), jnp.float32)
    params = init_params(kp, latent_channel_dim)

    out = jax.block_until_ready(jax.jit(encoder_forward)(x, params))
    assert out.shape == (16, latent_channel_dim, 4, 4), out.shape

    ref = jax.block_until_ready(reference_forward(x, params))
    # bf16 MXU operands (f32 accumulation) vs. f32 HIGHEST-precision reference.
    if not bool(jnp.allclose(out, ref, atol=5e-2, rtol=5e-2)):
        max_err = float(jnp.max(jnp.abs(out - ref)))
        raise AssertionError(f"Pallas encoder mismatches JAX reference (max |err|={max_err})")

    print("KERNEL_OK")
</pallas_src>

<mosaic_0001>
module attributes {stable_mosaic.version = 11 : i64} {
  func.func @_encoder_kernel(%arg0: i32, %arg1: memref<128x48xf32, #tpu.memory_space<vmem>>, %arg2: memref<3x48x256xbf16, #tpu.memory_space<vmem>>, %arg3: memref<3x256x128xbf16, #tpu.memory_space<vmem>>, %arg4: memref<1x256xf32, #tpu.memory_space<vmem>>, %arg5: memref<1x128xf32, #tpu.memory_space<vmem>>, %arg6: memref<32x128xf32, #tpu.memory_space<vmem>>, %arg7: memref<128x32xf32, #tpu.memory_space<vmem>>, %arg8: memref<1x8x128xf32, #tpu.memory_space<vmem>>) attributes {dimension_semantics = [#tpu.dimension_semantics<parallel>], iteration_bounds = array<i64: 2>, scalar_prefetch = 0 : i64, scratch_operands = 0 : i64, tpu.core_type = #tpu.core_type<tc>, window_params = [{transform_indices = @transform_0, window_bounds = array<i64: 128, 48>}, {pipeline_mode = #tpu.pipeline_mode<synchronous>, transform_indices = @transform_1, window_bounds = array<i64: 3, 48, 256>}, {pipeline_mode = #tpu.pipeline_mode<synchronous>, transform_indices = @transform_2, window_bounds = array<i64: 3, 256, 128>}, {pipeline_mode = #tpu.pipeline_mode<synchronous>, transform_indices = @transform_3, window_bounds = array<i64: 1, 256>}, {pipeline_mode = #tpu.pipeline_mode<synchronous>, transform_indices = @transform_4, window_bounds = array<i64: 1, 128>}, {pipeline_mode = #tpu.pipeline_mode<synchronous>, transform_indices = @transform_5, window_bounds = array<i64: 32, 128>}, {pipeline_mode = #tpu.pipeline_mode<synchronous>, transform_indices = @transform_6, window_bounds = array<i64: 128, 32>}, {transform_indices = @transform_7, window_bounds = array<i64: 1, 8, 128>}]} {
    %0 = tpu.iota {dimensions = array<i32: 0>} : vector<128x1xi32>
    %c16_i32 = arith.constant 16 : i32
    %c0_i32 = arith.constant 0 : i32
    %1 = arith.cmpi eq, %c16_i32, %c0_i32 : i32
    %c1_i32 = arith.constant 1 : i32
    %2 = arith.select %1, %c1_i32, %c16_i32 : i32
    %3 = vector.broadcast %2 : i32 to vector<128x1xi32>
    %4 = arith.remsi %0, %3 : vector<128x1xi32>
    %c0_i32_0 = arith.constant 0 : i32
    %5 = vector.broadcast %c0_i32_0 : i32 to vector<128x1xi32>
    %6 = arith.cmpi ne, %4, %5 : vector<128x1xi32>
    %c0_i32_1 = arith.constant 0 : i32
    %7 = vector.broadcast %c0_i32_1 : i32 to vector<128x1xi32>
    %8 = arith.cmpi slt, %4, %7 : vector<128x1xi32>
    %c0_i32_2 = arith.constant 0 : i32
    %9 = arith.cmpi slt, %2, %c0_i32_2 : i32
    %10 = vector.broadcast %9 : i1 to vector<128x1xi1>
    %11 = vector.broadcast %10 : vector<128x1xi1> to vector<128x1xi1>
    %12 = arith.xori %8, %11 : vector<128x1xi1>
    %13 = arith.andi %12, %6 : vector<128x1xi1>
    %14 = vector.broadcast %2 : i32 to vector<128x1xi32>
    %15 = arith.addi %4, %14 : vector<128x1xi32>
    %16 = arith.select %13, %15, %4 : vector<128x1xi1>, vector<128x1xi32>
    %c0 = arith.constant 0 : index
    %c0_3 = arith.constant 0 : index
    %17 = vector.load %arg1[%c0, %c0_3] : memref<128x48xf32, #tpu.memory_space<vmem>>, vector<128x48xf32>
    %cst = arith.constant 0.000000e+00 : f32
    %18 = vector.broadcast %cst : f32 to vector<128x256xf32>
    %cst_4 = arith.constant 0.000000e+00 : f32
    %19 = vector.broadcast %cst_4 : f32 to vector<1x48xf32>
    %20 = vector.extract_strided_slice %17 {offsets = [0, 0], sizes = [127, 48], strides = [1, 1]} : vector<128x48xf32> to vector<127x48xf32>
    %21 = tpu.concatenate %19, %20 in 0 : vector<1x48xf32>, vector<127x48xf32> -> vector<128x48xf32>
    %c-1_i32 = arith.constant -1 : i32
    %22 = vector.broadcast %c-1_i32 : i32 to vector<128x1xi32>
    %23 = arith.addi %16, %22 : vector<128x1xi32>
    %c0_i32_5 = arith.constant 0 : i32
    %24 = vector.broadcast %c0_i32_5 : i32 to vector<128x1xi32>
    %25 = arith.cmpi sge, %23, %24 : vector<128x1xi32>
    %c-1_i32_6 = arith.constant -1 : i32
    %26 = vector.broadcast %c-1_i32_6 : i32 to vector<128x1xi32>
    %27 = arith.addi %16, %26 : vector<128x1xi32>
    %c16_i32_7 = arith.constant 16 : i32
    %28 = vector.broadcast %c16_i32_7 : i32 to vector<128x1xi32>
    %29 = arith.cmpi slt, %27, %28 : vector<128x1xi32>
    %30 = arith.andi %25, %29 : vector<128x1xi1>
    %cst_8 = arith.constant 0.000000e+00 : f32
    %31 = vector.shape_cast %30 : vector<128x1xi1> to vector<128x1xi1>
    %32 = vector.broadcast %31 : vector<128x1xi1> to vector<128x48xi1>
    %33 = vector.broadcast %cst_8 : f32 to vector<128x48xf32>
    %34 = arith.select %32, %21, %33 : vector<128x48xi1>, vector<128x48xf32>
    %35 = arith.truncf %34 : vector<128x48xf32> to vector<128x48xbf16>
    %c0_9 = arith.constant 0 : index
    %c0_10 = arith.constant 0 : index
    %c0_11 = arith.constant 0 : index
    %36 = vector.load %arg2[%c0_9, %c0_10, %c0_11] : memref<3x48x256xbf16, #tpu.memory_space<vmem>>, vector<1x48x256xbf16>
    %37 = vector.shape_cast %36 : vector<1x48x256xbf16> to vector<48x256xbf16>
    %cst_12 = arith.constant dense<0.000000e+00> : vector<128x256xf32>
    %38 = tpu.matmul %35, %37, %cst_12 {dimension_numbers = #tpu.dot_dimension_numbers<[1], [0], [0], [1], [0, 0, 1, 1], [], []>} : vector<128x48xbf16>, vector<48x256xbf16>, vector<128x256xf32> -> vector<128x256xf32>
    %39 = arith.addf %18, %38 : vector<128x256xf32>
    %40 = arith.truncf %17 : vector<128x48xf32> to vector<128x48xbf16>
    %c1 = arith.constant 1 : index
    %c0_13 = arith.constant 0 : index
    %c0_14 = arith.constant 0 : index
    %41 = vector.load %arg2[%c1, %c0_13, %c0_14] : memref<3x48x256xbf16, #tpu.memory_space<vmem>>, vector<1x48x256xbf16>
    %42 = vector.shape_cast %41 : vector<1x48x256xbf16> to vector<48x256xbf16>
    %cst_15 = arith.constant dense<0.000000e+00> : vector<128x256xf32>
    %43 = tpu.matmul %40, %42, %cst_15 {dimension_numbers = #tpu.dot_dimension_numbers<[1], [0], [0], [1], [0, 0, 1, 1], [], []>} : vector<128x48xbf16>, vector<48x256xbf16>, vector<128x256xf32> -> vector<128x256xf32>
    %44 = arith.addf %39, %43 : vector<128x256xf32>
    %cst_16 = arith.constant 0.000000e+00 : f32
    %45 = vector.broadcast %cst_16 : f32 to vector<1x48xf32>
    %46 = vector.extract_strided_slice %17 {offsets = [1, 0], sizes = [127, 48], strides = [1, 1]} : vector<128x48xf32> to vector<127x48xf32>
    %47 = tpu.concatenate %46, %45 in 0 : vector<127x48xf32>, vector<1x48xf32> -> vector<128x48xf32>
    %c1_i32_17 = arith.constant 1 : i32
    %48 = vector.broadcast %c1_i32_17 : i32 to vector<128x1xi32>
    %49 = arith.addi %16, %48 : vector<128x1xi32>
    %c0_i32_18 = arith.constant 0 : i32
    %50 = vector.broadcast %c0_i32_18 : i32 to vector<128x1xi32>
    %51 = arith.cmpi sge, %49, %50 : vector<128x1xi32>
    %c1_i32_19 = arith.constant 1 : i32
    %52 = vector.broadcast %c1_i32_19 : i32 to vector<128x1xi32>
    %53 = arith.addi %16, %52 : vector<128x1xi32>
    %c16_i32_20 = arith.constant 16 : i32
    %54 = vector.broadcast %c16_i32_20 : i32 to vector<128x1xi32>
    %55 = arith.cmpi slt, %53, %54 : vector<128x1xi32>
    %56 = arith.andi %51, %55 : vector<128x1xi1>
    %cst_21 = arith.constant 0.000000e+00 : f32
    %57 = vector.shape_cast %56 : vector<128x1xi1> to vector<128x1xi1>
    %58 = vector.broadcast %57 : vector<128x1xi1> to vector<128x48xi1>
    %59 = vector.broadcast %cst_21 : f32 to vector<128x48xf32>
    %60 = arith.select %58, %47, %59 : vector<128x48xi1>, vector<128x48xf32>
    %61 = arith.truncf %60 : vector<128x48xf32> to vector<128x48xbf16>
    %c2 = arith.constant 2 : index
    %c0_22 = arith.constant 0 : index
    %c0_23 = arith.constant 0 : index
    %62 = vector.load %arg2[%c2, %c0_22, %c0_23] : memref<3x48x256xbf16, #tpu.memory_space<vmem>>, vector<1x48x256xbf16>
    %63 = vector.shape_cast %62 : vector<1x48x256xbf16> to vector<48x256xbf16>
    %cst_24 = arith.constant dense<0.000000e+00> : vector<128x256xf32>
    %64 = tpu.matmul %61, %63, %cst_24 {dimension_numbers = #tpu.dot_dimension_numbers<[1], [0], [0], [1], [0, 0, 1, 1], [], []>} : vector<128x48xbf16>, vector<48x256xbf16>, vector<128x256xf32> -> vector<128x256xf32>
    %65 = arith.addf %44, %64 : vector<128x256xf32>
    %c0_25 = arith.constant 0 : index
    %c0_26 = arith.constant 0 : index
    %66 = vector.load %arg4[%c0_25, %c0_26] : memref<1x256xf32, #tpu.memory_space<vmem>>, vector<1x256xf32>
    %67 = vector.broadcast %66 : vector<1x256xf32> to vector<128x256xf32>
    %68 = arith.addf %65, %67 : vector<128x256xf32>
    %cst_27 = arith.constant 0.000000e+00 : f32
    %69 = vector.broadcast %cst_27 : f32 to vector<128x256xf32>
    %70 = arith.maximumf %68, %69 : vector<128x256xf32>
    %cst_28 = arith.constant 0.000000e+00 : f32
    %71 = vector.broadcast %cst_28 : f32 to vector<1x256xf32>
    %72 = vector.extract_strided_slice %70 {offsets = [1, 0], sizes = [127, 256], strides = [1, 1]} : vector<128x256xf32> to vector<127x256xf32>
    %73 = tpu.concatenate %72, %71 in 0 : vector<127x256xf32>, vector<1x256xf32> -> vector<128x256xf32>
    %74 = arith.maximumf %70, %73 : vector<128x256xf32>
    %cst_29 = arith.constant 0.000000e+00 : f32
    %75 = vector.broadcast %cst_29 : f32 to vector<128x16xf32>
    %76 = vector.extract_strided_slice %74 {offsets = [0, 16], sizes = [128, 240], strides = [1, 1]} : vector<128x256xf32> to vector<128x240xf32>
    %77 = tpu.concatenate %76, %75 in 1 : vector<128x240xf32>, vector<128x16xf32> -> vector<128x256xf32>
    %78 = arith.maximumf %74, %77 : vector<128x256xf32>
    %cst_30 = arith.constant 0.000000e+00 : f32
    %79 = vector.broadcast %cst_30 : f32 to vector<128x128xf32>
    %cst_31 = arith.constant 0.000000e+00 : f32
    %80 = vector.broadcast %cst_31 : f32 to vector<2x256xf32>
    %81 = vector.extract_strided_slice %78 {offsets = [0, 0], sizes = [126, 256], strides = [1, 1]} : vector<128x256xf32> to vector<126x256xf32>
    %82 = tpu.concatenate %80, %81 in 0 : vector<2x256xf32>, vector<126x256xf32> -> vector<128x256xf32>
    %c-2_i32 = arith.constant -2 : i32
    %83 = vector.broadcast %c-2_i32 : i32 to vector<128x1xi32>
    %84 = arith.addi %16, %83 : vector<128x1xi32>
    %c0_i32_32 = arith.constant 0 : i32
    %85 = vector.broadcast %c0_i32_32 : i32 to vector<128x1xi32>
    %86 = arith.cmpi sge, %84, %85 : vector<128x1xi32>
    %c-2_i32_33 = arith.constant -2 : i32
    %87 = vector.broadcast %c-2_i32_33 : i32 to vector<128x1xi32>
    %88 = arith.addi %16, %87 : vector<128x1xi32>
    %c16_i32_34 = arith.constant 16 : i32
    %89 = vector.broadcast %c16_i32_34 : i32 to vector<128x1xi32>
    %90 = arith.cmpi slt, %88, %89 : vector<128x1xi32>
    %91 = arith.andi %86, %90 : vector<128x1xi1>
    %cst_35 = arith.constant 0.000000e+00 : f32
    %92 = vector.shape_cast %91 : vector<128x1xi1> to vector<128x1xi1>
    %93 = vector.broadcast %92 : vector<128x1xi1> to vector<128x256xi1>
    %94 = vector.broadcast %cst_35 : f32 to vector<128x256xf32>
    %95 = arith.select %93, %82, %94 : vector<128x256xi1>, vector<128x256xf32>
    %96 = arith.truncf %95 : vector<128x256xf32> to vector<128x256xbf16>
    %c0_36 = arith.constant 0 : index
    %c0_37 = arith.constant 0 : index
    %c0_38 = arith.constant 0 : index
    %97 = vector.load %arg3[%c0_36, %c0_37, %c0_38] : memref<3x256x128xbf16, #tpu.memory_space<vmem>>, vector<1x256x128xbf16>
    %98 = vector.shape_cast %97 : vector<1x256x128xbf16> to vector<256x128xbf16>
    %cst_39 = arith.constant dense<0.000000e+00> : vector<128x128xf32>
    %99 = tpu.matmul %96, %98, %cst_39 {dimension_numbers = #tpu.dot_dimension_numbers<[1], [0], [0], [1], [0, 0, 1, 1], [], []>} : vector<128x256xbf16>, vector<256x128xbf16>, vector<128x128xf32> -> vector<128x128xf32>
    %100 = arith.addf %79, %99 : vector<128x128xf32>
    %101 = arith.truncf %78 : vector<128x256xf32> to vector<128x256xbf16>
    %c1_40 = arith.constant 1 : index
    %c0_41 = arith.constant 0 : index
    %c0_42 = arith.constant 0 : index
    %102 = vector.load %arg3[%c1_40, %c0_41, %c0_42] : memref<3x256x128xbf16, #tpu.memory_space<vmem>>, vector<1x256x128xbf16>
    %103 = vector.shape_cast %102 : vector<1x256x128xbf16> to vector<256x128xbf16>
    %cst_43 = arith.constant dense<0.000000e+00> : vector<128x128xf32>
    %104 = tpu.matmul %101, %103, %cst_43 {dimension_numbers = #tpu.dot_dimension_numbers<[1], [0], [0], [1], [0, 0, 1, 1], [], []>} : vector<128x256xbf16>, vector<256x128xbf16>, vector<128x128xf32> -> vector<128x128xf32>
    %105 = arith.addf %100, %104 : vector<128x128xf32>
    %cst_44 = arith.constant 0.000000e+00 : f32
    %106 = vector.broadcast %cst_44 : f32 to vector<2x256xf32>
    %107 = vector.extract_strided_slice %78 {offsets = [2, 0], sizes = [126, 256], strides = [1, 1]} : vector<128x256xf32> to vector<126x256xf32>
    %108 = tpu.concatenate %107, %106 in 0 : vector<126x256xf32>, vector<2x256xf32> -> vector<128x256xf32>
    %c2_i32 = arith.constant 2 : i32
    %109 = vector.broadcast %c2_i32 : i32 to vector<128x1xi32>
    %110 = arith.addi %16, %109 : vector<128x1xi32>
    %c0_i32_45 = arith.constant 0 : i32
    %111 = vector.broadcast %c0_i32_45 : i32 to vector<128x1xi32>
    %112 = arith.cmpi sge, %110, %111 : vector<128x1xi32>
    %c2_i32_46 = arith.constant 2 : i32
    %113 = vector.broadcast %c2_i32_46 : i32 to vector<128x1xi32>
    %114 = arith.addi %16, %113 : vector<128x1xi32>
    %c16_i32_47 = arith.constant 16 : i32
    %115 = vector.broadcast %c16_i32_47 : i32 to vector<128x1xi32>
    %116 = arith.cmpi slt, %114, %115 : vector<128x1xi32>
    %117 = arith.andi %112, %116 : vector<128x1xi1>
    %cst_48 = arith.constant 0.000000e+00 : f32
    %118 = vector.shape_cast %117 : vector<128x1xi1> to vector<128x1xi1>
    %119 = vector.broadcast %118 : vector<128x1xi1> to vector<128x256xi1>
    %120 = vector.broadcast %cst_48 : f32 to vector<128x256xf32>
    %121 = arith.select %119, %108, %120 : vector<128x256xi1>, vector<128x256xf32>
    %122 = arith.truncf %121 : vector<128x256xf32> to vector<128x256xbf16>
    %c2_49 = arith.constant 2 : index
    %c0_50 = arith.constant 0 : index
    %c0_51 = arith.constant 0 : index
    %123 = vector.load %arg3[%c2_49, %c0_50, %c0_51] : memref<3x256x128xbf16, #tpu.memory_space<vmem>>, vector<1x256x128xbf16>
    %124 = vector.shape_cast %123 : vector<1x256x128xbf16> to vector<256x128xbf16>
    %cst_52 = arith.constant dense<0.000000e+00> : vector<128x128xf32>
    %125 = tpu.matmul %122, %124, %cst_52 {dimension_numbers = #tpu.dot_dimension_numbers<[1], [0], [0], [1], [0, 0, 1, 1], [], []>} : vector<128x256xbf16>, vector<256x128xbf16>, vector<128x128xf32> -> vector<128x128xf32>
    %126 = arith.addf %105, %125 : vector<128x128xf32>
    %c0_53 = arith.constant 0 : index
    %c0_54 = arith.constant 0 : index
    %127 = vector.load %arg5[%c0_53, %c0_54] : memref<1x128xf32, #tpu.memory_space<vmem>>, vector<1x128xf32>
    %128 = vector.broadcast %127 : vector<1x128xf32> to vector<128x128xf32>
    %129 = arith.addf %126, %128 : vector<128x128xf32>
    %cst_55 = arith.constant 0.000000e+00 : f32
    %130 = vector.broadcast %cst_55 : f32 to vector<128x128xf32>
    %131 = arith.maximumf %129, %130 : vector<128x128xf32>
    %cst_56 = arith.constant 0.000000e+00 : f32
    %132 = vector.broadcast %cst_56 : f32 to vector<2x128xf32>
    %133 = vector.extract_strided_slice %131 {offsets = [2, 0], sizes = [126, 128], strides = [1, 1]} : vector<128x128xf32> to vector<126x128xf32>
    %134 = tpu.concatenate %133, %132 in 0 : vector<126x128xf32>, vector<2x128xf32> -> vector<128x128xf32>
    %135 = arith.maximumf %131, %134 : vector<128x128xf32>
    %cst_57 = arith.constant 0.000000e+00 : f32
    %136 = vector.broadcast %cst_57 : f32 to vector<128x16xf32>
    %137 = vector.extract_strided_slice %135 {offsets = [0, 16], sizes = [128, 112], strides = [1, 1]} : vector<128x128xf32> to vector<128x112xf32>
    %138 = tpu.concatenate %137, %136 in 1 : vector<128x112xf32>, vector<128x16xf32> -> vector<128x128xf32>
    %139 = arith.maximumf %135, %138 : vector<128x128xf32>
    %c0_58 = arith.constant 0 : index
    %c0_59 = arith.constant 0 : index
    %140 = vector.load %arg7[%c0_58, %c0_59] : memref<128x32xf32, #tpu.memory_space<vmem>>, vector<128x32xf32>
    %cst_60 = arith.constant dense<0.000000e+00> : vector<128x32xf32>
    %141 = tpu.matmul %139, %140, %cst_60 {dimension_numbers = #tpu.dot_dimension_numbers<[1], [0], [0], [1], [0, 0, 1, 1], [], []>} : vector<128x128xf32>, vector<128x32xf32>, vector<128x32xf32> -> vector<128x32xf32>
    %c0_61 = arith.constant 0 : index
    %c0_62 = arith.constant 0 : index
    %142 = vector.load %arg6[%c0_61, %c0_62] : memref<32x128xf32, #tpu.memory_space<vmem>>, vector<32x128xf32>
    %cst_63 = arith.constant dense<0.000000e+00> : vector<32x32xf32>
    %143 = tpu.matmul %142, %141, %cst_63 {dimension_numbers = #tpu.dot_dimension_numbers<[1], [0], [0], [1], [0, 0, 1, 1], [], []>} : vector<32x128xf32>, vector<128x32xf32>, vector<32x32xf32> -> vector<32x32xf32>
    %144 = vector.extract_strided_slice %143 {offsets = [0, 0], sizes = [8, 32], strides = [1, 1]} : vector<32x32xf32> to vector<8x32xf32>
    %145 = vector.extract_strided_slice %143 {offsets = [8, 0], sizes = [8, 32], strides = [1, 1]} : vector<32x32xf32> to vector<8x32xf32>
    %146 = vector.extract_strided_slice %143 {offsets = [16, 0], sizes = [8, 32], strides = [1, 1]} : vector<32x32xf32> to vector<8x32xf32>
    %147 = vector.extract_strided_slice %143 {offsets = [24, 0], sizes = [8, 32], strides = [1, 1]} : vector<32x32xf32> to vector<8x32xf32>
    %148 = tpu.concatenate %144, %145, %146, %147 in 1 : vector<8x32xf32>, vector<8x32xf32>, vector<8x32xf32>, vector<8x32xf32> -> vector<8x128xf32>
    %c0_64 = arith.constant 0 : index
    %c0_65 = arith.constant 0 : index
    %c0_66 = arith.constant 0 : index
    %149 = vector.load %arg8[%c0_64, %c0_65, %c0_66] : memref<1x8x128xf32, #tpu.memory_space<vmem>>, vector<1x8x128xf32>
    %150 = vector.shape_cast %149 : vector<1x8x128xf32> to vector<8x128xf32>
    %151 = vector.shape_cast %148 : vector<8x128xf32> to vector<1x8x128xf32>
    tpu.vector_store %arg8[%c0_64, %c0_65, %c0_66], %151 {strides = array<i32>} : memref<1x8x128xf32, #tpu.memory_space<vmem>>, vector<1x8x128xf32>,
    return
  }
  func.func @transform_0(%arg0: i32) -> (i32, i32) {
    %c0_i32 = arith.constant 0 : i32
    %c0_i32_0 = arith.constant 0 : i32
    return %arg0, %c0_i32 : i32, i32
  }
  func.func @transform_1(%arg0: i32) -> (i32, i32, i32) {
    %c0_i32 = arith.constant 0 : i32
    %c0_i32_0 = arith.constant 0 : i32
    %c0_i32_1 = arith.constant 0 : i32
    %c0_i32_2 = arith.constant 0 : i32
    return %c0_i32, %c0_i32_0, %c0_i32_1 : i32, i32, i32
  }
  func.func @transform_2(%arg0: i32) -> (i32, i32, i32) {
    %c0_i32 = arith.constant 0 : i32
    %c0_i32_0 = arith.constant 0 : i32
    %c0_i32_1 = arith.constant 0 : i32
    %c0_i32_2 = arith.constant 0 : i32
    return %c0_i32, %c0_i32_0, %c0_i32_1 : i32, i32, i32
  }
  func.func @transform_3(%arg0: i32) -> (i32, i32) {
    %c0_i32 = arith.constant 0 : i32
    %c0_i32_0 = arith.constant 0 : i32
    %c0_i32_1 = arith.constant 0 : i32
    return %c0_i32, %c0_i32_0 : i32, i32
  }
  func.func @transform_4(%arg0: i32) -> (i32, i32) {
    %c0_i32 = arith.constant 0 : i32
    %c0_i32_0 = arith.constant 0 : i32
    %c0_i32_1 = arith.constant 0 : i32
    return %c0_i32, %c0_i32_0 : i32, i32
  }
  func.func @transform_5(%arg0: i32) -> (i32, i32) {
    %c0_i32 = arith.constant 0 : i32
    %c0_i32_0 = arith.constant 0 : i32
    %c0_i32_1 = arith.constant 0 : i32
    return %c0_i32, %c0_i32_0 : i32, i32
  }
  func.func @transform_6(%arg0: i32) -> (i32, i32) {
    %c0_i32 = arith.constant 0 : i32
    %c0_i32_0 = arith.constant 0 : i32
    %c0_i32_1 = arith.constant 0 : i32
    return %c0_i32, %c0_i32_0 : i32, i32
  }
  func.func @transform_7(%arg0: i32) -> (i32, i32, i32) {
    %c0_i32 = arith.constant 0 : i32
    %c0_i32_0 = arith.constant 0 : i32
    %c0_i32_1 = arith.constant 0 : i32
    return %arg0, %c0_i32, %c0_i32_0 : i32, i32, i32
  }
}

</mosaic_0001>

<bundles_post_ra>
// kernel: tile.13
= control target key start
LH: loop header
LB: loop body
LE: loop exit
PB: predicated region body
PF: predicated region fallthrough
CT: control target
= control target key end

     0   :  { %s28_s0 = inlined_call_operand.vmem [shape: f32[16], index: 0, kind: input, shape index: {}]   ;;  %s29_s1 = inlined_call_operand.vmem [shape: f32[16,16], index: 1, kind: output, shape index: {}]  }
   0x1   :  { %v4_v0 = vld [vmem:[%s28_s0] ss:$0 sm:$0xff] }
   0x2   :  { %5 = vst [vmem:[%s29_s1] sm:$0xff] %v4_v0  ;;  %8 = vst [vmem:[%s29_s1 + $0x8] sm:$0xff] %v4_v0 }

// kernel: tile.14
= control target key start
LH: loop header
LB: loop body
LE: loop exit
PB: predicated region body
PF: predicated region fallthrough
CT: control target
= control target key end

     0   :  { %s7_s6 = smov 3  ;;  %s21_s9 = smov 3  ;;  %vm4_vm0 = vcmask 130048   ;;  %vm11_vm1 = vcmask 1048448   ;;  %vm18_vm2 = vcmask 917248   ;;  %vm25_vm3 = vcmask 786048   ;;  %s128_s0 = inlined_call_operand.vmem [shape: f32[16,16], index: 0, kind: input, shape index: {}]   ;;  %s129_s1 = inlined_call_operand.vmem [shape: f32[1,256], index: 1, kind: output, shape index: {}]  }
   0x1   :  { %v66_v0 = vld [vmem:[%s128_s0 + $0x7] ss:$8 sm:%s7_s6]   ;;  %s81_s10 = smov 112   ;;  %v68_v1 = vld [vmem:[%s128_s0 + $0x5] ss:$8 sm:%s21_s9]   ;;  %s14_s13 = smov 3 }
   0x2   :  { %9 = vrot.lane.b32.xlu0 %v66_v0, %s81_s10  ;;  %s82_s14 = smov 80   ;;  %v67_v2 = vld [vmem:[%s128_s0 + $0x6] ss:$8 sm:%s14_s13]   ;;  %s28_s17 = smov 3  ;;  %vm32_vm4 = vcmask 654848   ;;  %vm39_vm5 = vcmask 523648  }
   0x3   :  { %23 = vrot.lane.b32.xlu1 %v68_v1, %s82_s14  ;;  %v69_v3 = vld [vmem:[%s128_s0 + $0x4] ss:$8 sm:%s28_s17]   ;;  %s35_s20 = smov 3  ;;  %s42_s21 = smov 3  ;;  %vm46_vm6 = vcmask 392448   ;;  %vm53_vm7 = vcmask 261248  }
   0x4   :  { %s83_s22 = smov 96   ;;  %s84_s23 = smov 64   ;;  %v70_v4 = vld [vmem:[%s128_s0 + $0x3] ss:$8 sm:%s35_s20]   ;;  %v71_v5 = vld [vmem:[%s128_s0 + $0x2] ss:$8 sm:%s42_s21]  }
   0x5   :  { %s2_s26 = smov 3  ;;  %s49_s29 = smov 3 }
   0x6   :  { %16 = vrot.lane.b32.xlu0 %v67_v2, %s83_s22  ;;  %v3_v6 = vld [vmem:[%s128_s0] ss:$8 sm:%s2_s26]   ;;  %s85_s3 = smov 48   ;;  %s86_s4 = smov 32  }
   0x7   :  { %30 = vrot.lane.b32.xlu1 %v69_v3, %s84_s23  ;;  %5 = vst.msk [vmem:[#allocation0] ss:$8 sm:$0x3] %vm4_vm0, %v3_v6   ;;  %v72_v7 = vld [vmem:[%s128_s0 + $0x1] ss:$8 sm:%s49_s29]   ;;  %s87_s0 = smov 16  }
   0xa   :  { %37 = vrot.lane.b32.xlu0 %v70_v4, %s85_s3 }
   0xb   :  { %44 = vrot.lane.b32.xlu1 %v71_v5, %s86_s4 }
   0xe   :  { %51 = vrot.lane.b32.xlu0 %v72_v7, %s87_s0 }
  0x74   :  { %v10_v8 = vpop.permute.xlu0 %9  }
  0x75   :  { %12 = vst.msk [vmem:[#allocation0] ss:$8 sm:$0x3] %vm11_vm1, %v10_v8   ;;  %v24_v9 = vpop.permute.xlu1 %23  }
  0x78   :  { %v17_v10 = vpop.permute.xlu0 %16  }
  0x79   :  { %19 = vst.msk [vmem:[#allocation0] ss:$8 sm:$0x3] %vm18_vm2, %v17_v10   ;;  %v31_v11 = vpop.permute.xlu1 %30  }
  0x7a   :  { %26 = vst.msk [vmem:[#allocation0] ss:$8 sm:$0x3] %vm25_vm3, %v24_v9  }
  0x7b   :  { %33 = vst.msk [vmem:[#allocation0] ss:$8 sm:$0x3] %vm32_vm4, %v31_v11  }
  0x7c   :  { %v38_v12 = vpop.permute.xlu0 %37  }
  0x7d   :  { %40 = vst.msk [vmem:[#allocation0] ss:$8 sm:$0x3] %vm39_vm5, %v38_v12   ;;  %v45_v13 = vpop.permute.xlu1 %44  }
  0x7e   :  { %47 = vst.msk [vmem:[#allocation0] ss:$8 sm:$0x3] %vm46_vm6, %v45_v13  }
  0x80   :  { %v52_v14 = vpop.permute.xlu0 %51  }
  0x81   :  { %54 = vst.msk [vmem:[#allocation0] ss:$8 sm:$0x3] %vm53_vm7, %v52_v14  }
  0x88   :  { %v58_v15 = vld [vmem:[#allocation0] sm:$0x1]  ;;  %v62_v16 = vld [vmem:[#allocation0 + $0x8] sm:$0x1] }
  0x89   :  { %60 = vst [vmem:[%s129_s1] sm:$0x1] %v58_v15  ;;  %73 = vst [vmem:[%s129_s1 + $0x1] sm:$0x1] %v62_v16 }

// kernel: tile.18
= control target key start
LH: loop header
LB: loop body
LE: loop exit
PB: predicated region body
PF: predicated region fallthrough
CT: control target
= control target key end

     0   :  { %s28_s0 = inlined_call_operand.vmem [shape: f32[8], index: 0, kind: input, shape index: {}]   ;;  %s29_s1 = inlined_call_operand.vmem [shape: f32[16,8], index: 1, kind: output, shape index: {}]  }
   0x1   :  { %v4_v0 = vld [vmem:[%s28_s0] ss:$0 sm:$0xff] }
   0x2   :  { %5 = vst [vmem:[%s29_s1] sm:$0xff] %v4_v0  ;;  %8 = vst [vmem:[%s29_s1 + $0x8] sm:$0xff] %v4_v0 }

// kernel: tile.19
= control target key start
LH: loop header
LB: loop body
LE: loop exit
PB: predicated region body
PF: predicated region fallthrough
CT: control target
= control target key end

     0   :  { %s131_s10 = smov 120   ;;  %s132_s11 = smov 104   ;;  %vm3_vm0 = vcmask 64512   ;;  %vm9_vm1 = vcmask 1048512   ;;  %vm15_vm2 = vcmask 982912   ;;  %vm21_vm3 = vcmask 917312   ;;  %s207_s0 = inlined_call_operand.vmem [shape: f32[16,8], index: 0, kind: input, shape index: {}]   ;;  %s208_s1 = inlined_call_operand.vmem [shape: f32[1,128], index: 1, kind: output, shape index: {}]  }
   0x1   :  { %v101_v0 = vld [vmem:[%s207_s0 + $0xf] sm:$0x1]   ;;  %v103_v1 = vld [vmem:[%s207_s0 + $0xd] sm:$0x1]   ;;  %v102_v2 = vld [vmem:[%s207_s0 + $0xe] sm:$0x1]  }
   0x2   :  { %7 = vrot.lane.b32.xlu0 %v101_v0, %s131_s10  ;;  %19 = vrot.lane.b32.xlu1 %v103_v1, %s132_s11  ;;  %v104_v3 = vld [vmem:[%s207_s0 + $0xc] sm:$0x1]   ;;  %s133_s16 = smov 112   ;;  %s134_s17 = smov 96   ;;  %v105_v4 = vld [vmem:[%s207_s0 + $0xb] sm:$0x1]  }
   0x3   :  { %v106_v5 = vld [vmem:[%s207_s0 + $0xa] sm:$0x1]   ;;  %v2_v6 = vld [vmem:[%s207_s0] sm:$0x1]   ;;  %s135_s24 = smov 88   ;;  %s136_s25 = smov 80  }
   0x4   :  { %4 = vst.msk [vmem:[#allocation0] sm:$0x1] %vm3_vm0, %v2_v6   ;;  %v107_v7 = vld [vmem:[%s207_s0 + $0x9] sm:$0x1]   ;;  %v108_v8 = vld [vmem:[%s207_s0 + $0x8] sm:$0x1]  }
   0x5   :  { %s137_s30 = smov 72   ;;  %s138_s2 = smov 64   ;;  %v109_v9 = vld [vmem:[%s207_s0 + $0x7] sm:$0x1]   ;;  %v110_v10 = vld [vmem:[%s207_s0 + $0x6] sm:$0x1]  }
   0x6   :  { %13 = vrot.lane.b32.xlu0 %v102_v2, %s133_s16  ;;  %25 = vrot.lane.b32.xlu1 %v104_v3, %s134_s17  ;;  %s139_s7 = smov 56   ;;  %s140_s8 = smov 48   ;;  %v111_v11 = vld [vmem:[%s207_s0 + $0x5] sm:$0x1]   ;;  %v112_v12 = vld [vmem:[%s207_s0 + $0x4] sm:$0x1]  }
   0x7   :  { %s141_s13 = smov 40   ;;  %s142_s14 = smov 32   ;;  %v113_v13 = vld [vmem:[%s207_s0 + $0x3] sm:$0x1]   ;;  %v114_v14 = vld [vmem:[%s207_s0 + $0x2] sm:$0x1]  }
   0x8   :  { %s143_s19 = smov 24   ;;  %s144_s20 = smov 16   ;;  %v115_v15 = vld [vmem:[%s207_s0 + $0x1] sm:$0x1]   ;;  %vm27_vm4 = vcmask 851712   ;;  %vm33_vm5 = vcmask 786112  }
   0x9   :  { %s145_s0 = smov 8   ;;  %vm39_vm6 = vcmask 720512   ;;  %vm45_vm7 = vcmask 654912   ;;  %vm51_vm8 = vcmask 589312   ;;  %vm57_vm9 = vcmask 523712  }
   0xa   :  { %31 = vrot.lane.b32.xlu0 %v105_v4, %s135_s24  ;;  %37 = vrot.lane.b32.xlu1 %v106_v5, %s136_s25  ;;  %vm63_vm10 = vcmask 458112   ;;  %vm69_vm11 = vcmask 392512   ;;  %vm75_vm12 = vcmask 326912   ;;  %vm81_vm13 = vcmask 261312  }
   0xb   :  { %vm87_vm14 = vcmask 195712   ;;  %vm93_vm15 = vcmask 130112  }
   0xe   :  { %43 = vrot.lane.b32.xlu0 %v107_v7, %s137_s30  ;;  %49 = vrot.lane.b32.xlu1 %v108_v8, %s138_s2 }
  0x12   :  { %55 = vrot.lane.b32.xlu0 %v109_v9, %s139_s7  ;;  %61 = vrot.lane.b32.xlu1 %v110_v10, %s140_s8 }
  0x16   :  { %67 = vrot.lane.b32.xlu0 %v111_v11, %s141_s13  ;;  %73 = vrot.lane.b32.xlu1 %v112_v12, %s142_s14 }
  0x1a   :  { %79 = vrot.lane.b32.xlu0 %v113_v13, %s143_s19  ;;  %85 = vrot.lane.b32.xlu1 %v114_v14, %s144_s20 }
  0x1e   :  { %91 = vrot.lane.b32.xlu0 %v115_v15, %s145_s0 }
  0x74   :  { %v8_v16 = vpop.permute.xlu0 %7   ;;  %v20_v17 = vpop.permute.xlu1 %19  }
  0x75   :  { %10 = vst.msk [vmem:[#allocation0] sm:$0x1] %vm9_vm1, %v8_v16  }
  0x78   :  { %v14_v18 = vpop.permute.xlu0 %13   ;;  %v26_v19 = vpop.permute.xlu1 %25  }
  0x79   :  { %16 = vst.msk [vmem:[#allocation0] sm:$0x1] %vm15_vm2, %v14_v18  }
  0x7a   :  { %22 = vst.msk [vmem:[#allocation0] sm:$0x1] %vm21_vm3, %v20_v17  }
  0x7b   :  { %28 = vst.msk [vmem:[#allocation0] sm:$0x1] %vm27_vm4, %v26_v19  }
  0x7c   :  { %v32_v20 = vpop.permute.xlu0 %31   ;;  %v38_v21 = vpop.permute.xlu1 %37  }
  0x7d   :  { %34 = vst.msk [vmem:[#allocation0] sm:$0x1] %vm33_vm5, %v32_v20  }
  0x7e   :  { %40 = vst.msk [vmem:[#allocation0] sm:$0x1] %vm39_vm6, %v38_v21  }
  0x80   :  { %v44_v22 = vpop.permute.xlu0 %43   ;;  %v50_v23 = vpop.permute.xlu1 %49  }
  0x81   :  { %46 = vst.msk [vmem:[#allocation0] sm:$0x1] %vm45_vm7, %v44_v22  }
  0x82   :  { %52 = vst.msk [vmem:[#allocation0] sm:$0x1] %vm51_vm8, %v50_v23  }
  0x84   :  { %v56_v24 = vpop.permute.xlu0 %55   ;;  %v62_v25 = vpop.permute.xlu1 %61  }
  0x85   :  { %58 = vst.msk [vmem:[#allocation0] sm:$0x1] %vm57_vm9, %v56_v24  }
  0x86   :  { %64 = vst.msk [vmem:[#allocation0] sm:$0x1] %vm63_vm10, %v62_v25  }
  0x88   :  { %v68_v26 = vpop.permute.xlu0 %67   ;;  %v74_v27 = vpop.permute.xlu1 %73  }
  0x89   :  { %70 = vst.msk [vmem:[#allocation0] sm:$0x1] %vm69_vm11, %v68_v26  }
  0x8a   :  { %76 = vst.msk [vmem:[#allocation0] sm:$0x1] %vm75_vm12, %v74_v27  }
  0x8c   :  { %v80_v28 = vpop.permute.xlu0 %79   ;;  %v86_v29 = vpop.permute.xlu1 %85  }
  0x8d   :  { %82 = vst.msk [vmem:[#allocation0] sm:$0x1] %vm81_vm13, %v80_v28  }
  0x8e   :  { %88 = vst.msk [vmem:[#allocation0] sm:$0x1] %vm87_vm14, %v86_v29  }
  0x90   :  { %v92_v30 = vpop.permute.xlu0 %91  }
  0x91   :  { %94 = vst.msk [vmem:[#allocation0] sm:$0x1] %vm93_vm15, %v92_v30  }
  0x98   :  { %v98_v31 = vld [vmem:[#allocation0] sm:$0x1] }
  0x99   :  { %100 = vst [vmem:[%s208_s1] sm:$0x1] %v98_v31 }

// kernel: encoder_forward.1
= control target key start
LH: loop header
LB: loop body
LE: loop exit
PB: predicated region body
PF: predicated region fallthrough
CT: control target
= control target key end

     0   :  { %s4612_s24 = smov 0   ;;  %s6208_s0 = inlined_call_operand.vmem [shape: f32[256,48], index: 0, kind: input, shape index: {}]   ;;  %s6209_s1 = inlined_call_operand.vmem [shape: bf16[3,48,256], index: 1, kind: input, shape index: {}]   ;;  %s6210_s2 = inlined_call_operand.vmem [shape: bf16[3,256,128], index: 2, kind: input, shape index: {}]   ;;  %s6211_s3 = inlined_call_operand.vmem [shape: f32[1,256], index: 3, kind: input, shape index: {}]   ;;  %s6212_s4 = inlined_call_operand.vmem [shape: f32[1,128], index: 4, kind: input, shape index: {}]   ;;  %s6213_s5 = inlined_call_operand.vmem [shape: f32[32,128], index: 5, kind: input, shape index: {}]   ;;  %s6214_s6 = inlined_call_operand.vmem [shape: f32[128,32], index: 6, kind: input, shape index: {}]   ;;  %s6215_s7 = inlined_call_operand.vmem [shape: f32[2,8,128], index: 7, kind: output, shape index: {}]  }
   0x1 LB: > { %s4618_s25 = sadd.s32 4294967295, %s4564_s24   ;;  %p3614_p0 = scmp.ge.s32.totalorder %s4564_s24, 1  ;;  %s4564_s24 = sphi %s4612_s24, %s17_s24  }
   0x2   : > { %p238_p1 = scmp.lt.s32.totalorder %s4564_s24, 3 }
   0x4   : > { %p239_p2 = pnand %p3614_p0, %p238_p1 }
   0x6   : > { %242 = sbr.rel (%p239_p2) target bundleno = 1604 (0x644), region = 48 }
   0xd   : > { %v4483_v0 = vld [vmem:[%s6209_s1 + $0x34] ss:$8 sps:$4 sm:$0xff]   ;;  %s3615_s28 = sshll.u32 %s4618_s25, 4  ;;  %v4485_v1 = vld [vmem:[%s6209_s1 + $0x30] ss:$8 sps:$4 sm:$0xff]   ;;  %v4566_v2 = vmov 0   ;;  %v280_v6 = vlaneseq }
   0xe   : > { %798 = vmatprep.mubr.bf16.mxu0 %v4566_v2  ;;  %p270_p3 = scmp.lt.s32.totalorder %s3615_s28, 31  ;;  %766 = vmatprep.subr.bf16.mxu0 %v4483_v0  ;;  %v4486_v3 = vld [vmem:[%s6209_s1 + $0x44] ss:$8 sps:$4 sm:$0xff]   ;;  %v4488_v4 = vld [vmem:[%s6209_s1 + $0x40] ss:$8 sps:$4 sm:$0xff]   ;;  %vm1046_vm0 = vcmask 1046528  }
   0xf   : > { %767 = vmatpush1.bf16.msra.mxu0 %v4485_v1  ;;  %v4489_v5 = vld [vmem:[%s6209_s1 + $0x54] ss:$8 sps:$4 sm:$0xff]   ;;  %v4491_v7 = vld [vmem:[%s6209_s1 + $0x50] ss:$8 sps:$4 sm:$0xff]   ;;  %v4494_v10 = vld [vmem:[%s6209_s1 + $0x4] ss:$8 sps:$4 sm:$0xff]  }
  0x10   : > { %s6371_s28 = smov (!%p270_p3, %s3615_s28), 31  ;;  %768 = vmatprep.subr.bf16.mxu0 %v4486_v3  ;;  %v4661_v14 = vshrl.u32 %v280_v6, 7  ;;  %vm741_vm1 = vcmask 392192   ;;  %v4492_v18 = vld [vmem:[%s6209_s1] ss:$8 sps:$4 sm:$0xff]   ;;  %vm521_vm8 = vcmask 1040384  }
  0x11   : > { %s3616_s14 = sshll.u32 %s6371_s28, 3  ;;  %v4497_v21 = vld [vmem:[%s6209_s1 + $0x14] ss:$8 sps:$4 sm:$0xff]   ;;  %v4495_v23 = vld [vmem:[%s6209_s1 + $0x10] ss:$8 sps:$4 sm:$0xff]   ;;  %s4567_s15 = smov 112  }
  0x12   : > { %s4642_s17 = scalar_lea.vmem %s6208_s0, %s3616_s14  ;;  %v4673_v19 = vadd.s32 8, %v4661_v14  ;;  %v4500_v25 = vld [vmem:[%s6209_s1 + $0x24] ss:$8 sps:$4 sm:$0xff]   ;;  %v4498_v27 = vld [vmem:[%s6209_s1 + $0x20] ss:$8 sps:$4 sm:$0xff]   ;;  %v4731_v42 = vadd.s32 24, %v4661_v14 }
  0x13   : > { %769 = vmatpush1.bf16.msra.mxu0 %v4488_v4  ;;  %v4648_v8 = vld [vmem:[%s4642_s17] sm:$0xff]  ;;  %v4651_v9 = vld [vmem:[%s4642_s17 + $0x8] sm:$0xff]  ;;  %v4659_v13 = vld [vmem:[%s4642_s17 + $0x10] sm:$0xff]  ;;  %v4740_v47 = vadd.s32 40, %v4661_v14  ;;  %v4760_v57 = vadd.s32 56, %v4661_v14  ;;  %v4771_v63 = vadd.s32 72, %v4661_v14 }
  0x14   : > { %770 = vmatprep.subr.bf16.mxu0 %v4489_v5  ;;  %v1047_v11 = vrot.slane %v4648_v8, 1  ;;  %v1048_v12 = vrot.slane %v4651_v9, 1  ;;  %v696_v15 = vpack.c.bf16 %v4651_v9, %v4648_v8  ;;  %v1050_v16 = vrot.slane %v4659_v13, 1  ;;  %6263 = vst [vmem:[#allocation2_spill] sm:$0xff] %v4673_v19  ;;  %v4682_v22 = vld [vmem:[%s4642_s17 + $0x18] sm:$0xff]  ;;  %v4703_v30 = vld [vmem:[%s4642_s17 + $0x20] sm:$0xff] }
  0x15   : > { %v6223_v24 = vand.u32 15, %v4673_v19  ;;  %v697_v26 = vpack.c.bf16 %v4682_v22, %v4659_v13  ;;  %v4503_v29 = vld [vmem:[%s6209_s1 + $0x64] ss:$8 sps:$4 sm:$0xff]   ;;  %v1052_v33 = vrot.slane %v4682_v22, 1  ;;  %v1054_v35 = vrot.slane %v4703_v30, 1  ;;  %v4717_v37 = vld [vmem:[%s4642_s17 + $0x30] sm:$0xff] }
  0x16   : > { %v4667_v17 = vsel %vm1046_vm0, %v1047_v11, %v1048_v12  ;;  %v1051_v20 = vsel %vm1046_vm0, %v1048_v12, %v1050_v16  ;;  %v4707_v31 = vld [vmem:[%s4642_s17 + $0x28] sm:$0xff]  ;;  %v1058_v38 = vrot.slane %v4717_v37, 1  ;;  %v4725_v40 = vld [vmem:[%s4642_s17 + $0x38] sm:$0xff]  ;;  %v4728_v41 = vld [vmem:[%s4642_s17 + $0x40] sm:$0xff]  ;;  %6264 = vst [vmem:[#allocation3_spill] sm:$0xff] %v4731_v42  ;;  %v6222_v48 = vand.u32 15, %v4731_v42 }
  0x17   : > { %771 = vmatpush1.bf16.msra.mxu0 %v4491_v7  ;;  %v1096_v28 = vadd.s32 1, %v6223_v24  ;;  %v698_v32 = vpack.c.bf16 %v4707_v31, %v4703_v30  ;;  %v1056_v36 = vrot.slane %v4707_v31, 1  ;;  %v4734_v43 = vsel %vm1046_vm0, %v1050_v16, %v1052_v33  ;;  %6265 = vst [vmem:[#allocation4_spill] sm:$0xff] %v4740_v47  ;;  %v4749_v51 = vld [vmem:[%s4642_s17 + $0x48] sm:$0xff]  ;;  %v4755_v55 = vld [vmem:[%s4642_s17 + $0x50] sm:$0xff]  ;;  %6266 = vst [vmem:[#allocation5_spill] sm:$0xff] %v4760_v57 }
  0x18   : > { %933 = vmatprep.subr.bf16.mxu0 %v4494_v10  ;;  %v1060_v44 = vrot.slane %v4725_v40, 1  ;;  %v1062_v45 = vrot.slane %v4728_v41, 1  ;;  %v1055_v46 = vsel %vm1046_vm0, %v1052_v33, %v1054_v35  ;;  %v699_v50 = vpack.c.bf16 %v4725_v40, %v4717_v37  ;;  %6267 = vst [vmem:[#allocation6_spill] sm:$0xff] %v4771_v63  ;;  %v4778_v1 = vld [vmem:[%s4642_s17 + $0x58] sm:$0xff]  ;;  %v4788_v7 = vld [vmem:[%s4642_s17 + $0x60] sm:$0xff]  ;;  %s4569_s21 = smov 32  }
  0x19   : > { %vm1128_vm2 = vcmp.lt.s32.totalorder %v1096_v28, 16  ;;  %v4744_v49 = vsel %vm1046_vm0, %v1054_v35, %v1056_v36  ;;  %v6221_v52 = vand.u32 15, %v4740_v47  ;;  %v1059_v53 = vsel %vm1046_vm0, %v1056_v36, %v1058_v38  ;;  %v4824_v35 = vld [vmem:[%s4642_s17 + $0x70] sm:$0xff]  ;;  %s4570_s22 = smov 96   ;;  %s4571_s23 = smov 64  }
  0x1a   : > { %3630 = vmatmul.mubr.msk.bf16.vlgmr.msra.gmra.mrb[0].mxu0 %vm741_vm1, %v696_v15  ;;  %v4712_v34 = vsel %vm1128_vm2, %v1051_v20, 0.0  ;;  %v1064_v54 = vrot.slane %v4749_v51, 1  ;;  %v1098_v56 = vadd.s32 1, %v6222_v48  ;;  %v1066_v58 = vrot.slane %v4755_v55, 1  ;;  %p275_p4 = scmp.lt.s32.totalorder %s4618_s25, 1 }
  0x1b   : > { %808 = vmatprep.mubr.bf16.mxu0 %v4566_v2  ;;  %934 = vmatpush1.bf16.msra.mxu0 %v4492_v18  ;;  %v1207_v39 = vpack.c.bf16 %v4712_v34, %v4667_v17  ;;  %v1100_v59 = vadd.s32 1, %v6221_v52  ;;  %v4766_v60 = vsel %vm1046_vm0, %v1058_v38, %v1060_v44  ;;  %v1063_v61 = vsel %vm1046_vm0, %v1060_v44, %v1062_v45  ;;  %v4510_v17 = vld [vmem:[%s6210_s2 + $0xc0] sm:$0xff]  }
  0x1c   : > { %935 = vmatprep.subr.bf16.mxu0 %v4497_v21  ;;  %vm1130_vm3 = vcmp.lt.s32.totalorder %v1098_v56, 16  ;;  %v6219_v62 = vand.u32 15, %v4760_v57  ;;  %v6218_v6 = vand.u32 15, %v4771_v63  ;;  %v4793_v11 = vsel %vm1046_vm0, %v1062_v45, %v1064_v54  ;;  %v4511_v34 = vld [vmem:[%s6210_s2 + $0x80] sm:$0xff]   ;;  %3883 = vmatprep.subr.bf16.mxu1 %v4510_v17  ;;  %s6373_s25 = smov (!%p275_p4, %s4618_s25), 1 }
  0x1d   : > { %v4774_v0 = vsel %vm1130_vm3, %v1055_v46, 0.0  ;;  %vm1132_vm4 = vcmp.lt.s32.totalorder %v1100_v59, 16  ;;  %v1067_v12 = vsel %vm1046_vm0, %v1064_v54, %v1066_v58  ;;  %v700_v16 = vpack.c.bf16 %v4749_v51, %v4728_v41  ;;  %3884 = vmatpush3.bf16.msra.mxu1 %v4511_v34  ;;  %v4522_v34 = vld [vmem:[%s6210_s2 + $0xf0] sm:$0xff]   ;;  %s3617_s26 = sshll.u32 %s6373_s25, 3 }
  0x1e   : > { %v1208_v3 = vpack.c.bf16 %v4774_v0, %v4734_v43  ;;  %v4782_v4 = vsel %vm1132_vm4, %v1059_v53, 0.0  ;;  %v1102_v5 = vadd.s32 1, %v6219_v62  ;;  %v1104_v15 = vadd.s32 1, %v6218_v6  ;;  %v4514_v43 = vld [vmem:[%s6210_s2 + $0xd0] sm:$0xff]   ;;  %v4518_v0 = vld [vmem:[%s6210_s2 + $0xe0] sm:$0xff]   ;;  %s278_s29 = scalar_lea.vmem %s6215_s7, %s3617_s26 }
  0x1f   : > { %936 = vmatpush1.bf16.msra.mxu0 %v4495_v23  ;;  %v1209_v10 = vpack.c.bf16 %v4782_v4, %v4744_v49  ;;  %v1068_v18 = vrot.slane %v4778_v1, 1  ;;  %v1070_v21 = vrot.slane %v4788_v7, 1  ;;  %v701_v38 = vpack.c.bf16 %v4778_v1, %v4755_v55  ;;  %v4515_v49 = vld [vmem:[%s6210_s2 + $0x90] sm:$0xff]   ;;  %v4520_v4 = vld [vmem:[%s6210_s2 + $0xe8] sm:$0xff]  }
  0x20   : > { %937 = vmatprep.subr.bf16.mxu0 %v4500_v25  ;;  %vm1134_vm5 = vcmp.lt.s32.totalorder %v1102_v5, 16  ;;  %vm1136_vm6 = vcmp.lt.s32.totalorder %v1104_v15, 16  ;;  %v1074_v45 = vrot.slane %v4824_v35, 1  ;;  %v4837_v53 = vadd.s32 104, %v4661_v14 }
  0x21   : > { %v4801_v20 = vsel %vm1134_vm5, %v1063_v61, 0.0  ;;  %v4806_v25 = vsel %vm1136_vm6, %v1067_v12, 0.0  ;;  %v1071_v33 = vsel %vm1046_vm0, %v1068_v18, %v1070_v21  ;;  %v6231_v54 = vand.u32 15, %v4661_v14 }
  0x22   : > { %3631 = vmatmul.mubr.msk.bf16.gmra.mrb[4].mxu0 %vm741_vm1, %v697_v26  ;;  %v1210_v23 = vpack.c.bf16 %v4801_v20, %v4766_v60  ;;  %v4809_v26 = vadd.s32 88, %v4661_v14  ;;  %6269 = vst [vmem:[#allocation8_spill] sm:$0xff] %v4837_v53  ;;  %v6216_v56 = vand.u32 15, %v4837_v53  ;;  %v527_v52 = vrot.slane %v4682_v22, 7  ;;  %v4516_v60 = vld [vmem:[%s6210_s2 + $0xd8] sm:$0xff]  }
  0x23   : > { %818 = vmatprep.mubr.bf16.mxu0 %v4566_v2  ;;  %938 = vmatpush1.bf16.msra.mxu0 %v4498_v27  ;;  %v1211_v27 = vpack.c.bf16 %v4806_v25, %v4793_v11  ;;  %v570_v12 = vadd.s32 4294967295, %v6231_v54  ;;  %v4914_v48 = vadd.s32 48, %v4661_v14  ;;  %v1421_v11 = vld [vmem:[%s6211_s3] sm:$0x3]  ;;  %v1429_v20 = vsub.s32 1, %v4661_v14 }
  0x24   : > { %1276 = vmatprep.subr.bf16.mxu0 %v4503_v29  ;;  %6268 = vst [vmem:[#allocation7_spill] sm:$0xff] %v4809_v26  ;;  %v6217_v28 = vand.u32 15, %v4809_v26  ;;  %v4817_v29 = vld [vmem:[%s4642_s17 + $0x68] sm:$0xff]  ;;  %v1108_v61 = vadd.s32 1, %v6216_v56  ;;  %vm1882_vm5 = vcmask 1041408  }
  0x25   : > { %v1072_v44 = vrot.slane %v4817_v29, 1  ;;  %v702_v5 = vpack.c.bf16 %v4817_v29, %v4788_v7  ;;  %vm586_vm10 = vcmp.ge.s32.totalorder %v570_v12, 0  ;;  %v6228_v24 = vand.u32 15, %v4914_v48 }
  0x26   : > { %v1106_v36 = vadd.s32 1, %v6217_v28  ;;  %vm1140_vm9 = vcmp.lt.s32.totalorder %v1108_v61, 16  ;;  %v5065_v25 = vrot.slane %v1421_v11, %v1429_v20  ;;  %v4524_v20 = vld [vmem:[%s6210_s2 + $0xf8] sm:$0xff]  }
  0x27   : > { %v1075_v59 = vsel %vm1046_vm0, %v1072_v44, %v1074_v45 }
  0x28   : > { %vm1138_vm7 = vcmp.lt.s32.totalorder %v1106_v36, 16  ;;  %v4853_v15 = vsel %vm1140_vm9, %v1075_v59, 0.0 }
  0x29   : > { %v4832_v46 = vsel %vm1138_vm7, %v1071_v33, 0.0  ;;  %v4863_v33 = vld [vmem:[%s4642_s17 + $0x78] sm:$0xff]  ;;  %vm4568_vm7 = vmmov 1  }
  0x2a   : > { %3632 = vmatmul.mubr.msk.bf16.gmra.mrb[8].mxu0 %vm741_vm1, %v698_v32  ;;  %v4820_v32 = vsel %vm1046_vm0, %v1066_v58, %v1068_v18  ;;  %v4844_v58 = vsel %vm1046_vm0, %v1070_v21, %v1072_v44  ;;  %v4859_v21 = vadd.s32 120, %v4661_v14  ;;  %v1076_v44 = vrot.slane %v4863_v33, 1 }
  0x2b   : > { %828 = vmatprep.mubr.bf16.mxu0 %v4566_v2  ;;  %v1213_v18 = vpack.c.bf16 %v4853_v15, %v4844_v58  ;;  %v703_v28 = vpack.c.bf16 %v4863_v33, %v4824_v35 }
  0x2c   : > { %6270 = vst [vmem:[#allocation9_spill] sm:$0xff] %v4859_v21  ;;  %v6220_v36 = vand.u32 15, %v4859_v21  ;;  %v4875_v61 = vsel %vm1046_vm0, %v1074_v45, %v1076_v44 }
  0x2e   : > { %v1110_v59 = vadd.s32 1, %v6220_v36 }
  0x30   : > { %vm1142_vm11 = vcmp.lt.s32.totalorder %v1110_v59, 16  ;;  %v4893_v59 = vadd.s32 32, %v4661_v14 }
  0x32   : > { %3633 = vmatmul.mubr.msk.bf16.gmra.mrb[12].mxu0 %vm741_vm1, %v699_v50  ;;  %v1212_v50 = vpack.c.bf16 %v4832_v46, %v4820_v32 }
  0x33   : > { %838 = vmatprep.mubr.bf16.mxu0 %v4566_v2 }
  0x3a   : > { %3634 = vmatmul.mubr.msk.bf16.gmra.mrb[16].mxu0 %vm741_vm1, %v700_v16  ;;  %v522_v16 = vrot.slane %v4648_v8, 7  ;;  %v523_v8 = vrot.slane %v4651_v9, 7 }
  0x3b   : > { %848 = vmatprep.mubr.bf16.mxu0 %v4566_v2 }
  0x3c   : > { %v569_v56 = vsel %vm521_vm8, 0.0, %v522_v16  ;;  %v524_v45 = vsel %vm521_vm8, %v522_v16, %v523_v8 }
  0x3d   : > { %v666_v12 = vsel %vm586_vm10, %v569_v56, 0.0  ;;  %v6229_v56 = vand.u32 15, %v4893_v59 }
  0x42   : > { %3635 = vmatmul.mubr.msk.bf16.gmra.mrb[20].mxu0 %vm741_vm1, %v701_v38  ;;  %v4868_v38 = vadd.s32 16, %v4661_v14 }
  0x43   : > { %858 = vmatprep.mubr.bf16.mxu0 %v4566_v2 }
  0x44   : > { %v6230_v6 = vand.u32 15, %v4868_v38 }
  0x46   : > { %v572_v36 = vadd.s32 4294967295, %v6230_v6 }
  0x48   : > { %vm588_vm12 = vcmp.ge.s32.totalorder %v572_v36, 0  ;;  %v529_v36 = vrot.slane %v4703_v30, 7 }
  0x4a   : > { %3636 = vmatmul.mubr.msk.bf16.gmra.mrb[24].mxu0 %vm741_vm1, %v702_v5  ;;  %v1094_v5 = vsel %vm1046_vm0, %v1076_v44, 0.0  ;;  %v525_v44 = vrot.slane %v4659_v13, 7  ;;  %v4506_v13 = vld [vmem:[%s6209_s1 + $0x74] ss:$8 sps:$4 sm:$0xff]   ;;  %v530_v30 = vsel %vm521_vm8, %v527_v52, %v529_v36 }
  0x4b   : > { %868 = vmatprep.mubr.bf16.mxu0 %v4566_v2  ;;  %v4882_v62 = vsel %vm1142_vm11, %v1094_v5, 0.0  ;;  %v682_v5 = vpack.c.bf16 %v524_v45, %v666_v12  ;;  %v4504_v12 = vld [vmem:[%s6209_s1 + $0x70] ss:$8 sps:$4 sm:$0xff]  }
  0x4c   : > { %v1214_v9 = vpack.c.bf16 %v4882_v62, %v4875_v61  ;;  %v526_v16 = vsel %vm521_vm8, %v523_v8, %v525_v44  ;;  %v528_v45 = vsel %vm521_vm8, %v525_v44, %v527_v52  ;;  %v574_v8 = vadd.s32 4294967295, %v6229_v56  ;;  %v4517_v62 = vld [vmem:[%s6210_s2 + $0x98] sm:$0xff]  }
  0x4d   : > { %v668_v22 = vsel %vm588_vm12, %v526_v16, 0.0  ;;  %v4507_v16 = vld [vmem:[%s6209_s1 + $0x80] ss:$8 sps:$4 sm:$0xff]  }
  0x4e   : > { %v683_v44 = vpack.c.bf16 %v528_v45, %v668_v22  ;;  %vm590_vm13 = vcmp.ge.s32.totalorder %v574_v8, 0  ;;  %v576_v22 = vadd.s32 4294967295, %v6228_v24  ;;  %v535_v8 = vrot.slane %v4725_v40, 7 }
  0x4f   : > { %v670_v45 = vsel %vm590_vm13, %v530_v30, 0.0 }
  0x50   : > { %vm592_vm14 = vcmp.ge.s32.totalorder %v576_v22, 0 }
  0x52   : > { %3637 = vmatmul.mubr.msk.bf16.gmra.mrb[28].mxu0 %vm741_vm1, %v703_v28  ;;  %v4501_v28 = vld [vmem:[%s6209_s1 + $0x60] ss:$8 sps:$4 sm:$0xff]  }
  0x53   : > { %965 = vmatprep.mubr.bf16.mxu0 %v4566_v2 }
  0x5a   : > { %3644 = vmatmul.mubr.msk.bf16.vlgmr.msra.gmra.mrb[0].mxu0 %vm741_vm1, %v682_v5  ;;  %v4509_v5 = vld [vmem:[%s6209_s1 + $0x84] ss:$8 sps:$4 sm:$0xff]  }
  0x5b   : > { %975 = vmatprep.mubr.bf16.mxu0 %v4566_v2  ;;  %1277 = vmatpush1.bf16.msra.mxu0 %v4501_v28  ;;  %v531_v28 = vrot.slane %v4707_v31, 7  ;;  %v533_v31 = vrot.slane %v4717_v37, 7 }
  0x5c   : > { %1278 = vmatprep.subr.bf16.mxu0 %v4506_v13 }
  0x5d   : > { %v532_v13 = vsel %vm521_vm8, %v529_v36, %v531_v28  ;;  %v536_v37 = vsel %vm521_vm8, %v533_v31, %v535_v8 }
  0x5e   : > { %v684_v52 = vpack.c.bf16 %v532_v13, %v670_v45  ;;  %v4944_v13 = vadd.s32 80, %v4661_v14 }
  0x5f   : > { %1279 = vmatpush1.bf16.msra.mxu0 %v4504_v12  ;;  %v4932_v12 = vadd.s32 64, %v4661_v14 }
  0x60   : > { %1280 = vmatprep.subr.bf16.mxu0 %v4509_v5  ;;  %v534_v5 = vsel %vm521_vm8, %v531_v28, %v533_v31  ;;  %6271 = vst [vmem:[#allocation10_spill] sm:$0xff] %v4944_v13  ;;  %v539_v28 = vrot.slane %v4749_v51, 7  ;;  %v6226_v22 = vand.u32 15, %v4944_v13 }
  0x61   : > { %v672_v36 = vsel %vm592_vm14, %v534_v5, 0.0 }
  0x62   : > { %3645 = vmatmul.mubr.msk.bf16.gmra.mrb[4].mxu0 %vm741_vm1, %v683_v44  ;;  %v6227_v44 = vand.u32 15, %v4932_v12  ;;  %v685_v40 = vpack.c.bf16 %v536_v37, %v672_v36  ;;  %v580_v5 = vadd.s32 4294967295, %v6226_v22  ;;  %v4956_v37 = vadd.s32 96, %v4661_v14 }
  0x63   : > { %985 = vmatprep.mubr.bf16.mxu0 %v4566_v2  ;;  %1281 = vmatpush1.bf16.msra.mxu0 %v4507_v16  ;;  %v537_v16 = vrot.slane %v4728_v41, 7 }
  0x64   : > { %v578_v30 = vadd.s32 4294967295, %v6227_v44  ;;  %6272 = vst [vmem:[#allocation11_spill] sm:$0xff] %v4956_v37  ;;  %vm596_vm2 = vcmp.ge.s32.totalorder %v580_v5, 0 }
  0x65   : > { %v538_v45 = vsel %vm521_vm8, %v535_v8, %v537_v16  ;;  %v540_v41 = vsel %vm521_vm8, %v537_v16, %v539_v28  ;;  %v543_v8 = vrot.slane %v4778_v1, 7 }
  0x66   : > { %vm594_vm15 = vcmp.ge.s32.totalorder %v578_v30, 0  ;;  %v6225_v30 = vand.u32 15, %v4956_v37 }
  0x67   : > { %v674_v31 = vsel %vm594_vm15, %v538_v45, 0.0 }
  0x68   : > { %v686_v51 = vpack.c.bf16 %v540_v41, %v674_v31  ;;  %v582_v45 = vadd.s32 4294967295, %v6225_v30  ;;  %v4968_v41 = vadd.s32 112, %v4661_v14 }
  0x6a   : > { %3646 = vmatmul.mubr.msk.bf16.gmra.mrb[8].mxu0 %vm741_vm1, %v684_v52  ;;  %v541_v52 = vrot.slane %v4755_v55, 7  ;;  %6273 = vst [vmem:[#allocation12_spill] sm:$0xff] %v4968_v41  ;;  %vm598_vm3 = vcmp.ge.s32.totalorder %v582_v45, 0  ;;  %v6224_v5 = vand.u32 15, %v4968_v41 }
  0x6b   : > { %995 = vmatprep.mubr.bf16.mxu0 %v4566_v2 }
  0x6c   : > { %v542_v36 = vsel %vm521_vm8, %v539_v28, %v541_v52  ;;  %v544_v55 = vsel %vm521_vm8, %v541_v52, %v543_v8  ;;  %v547_v28 = vrot.slane %v4817_v29, 7  ;;  %v551_v29 = vrot.slane %v4863_v33, 7 }
  0x6d   : > { %v676_v16 = vsel %vm596_vm2, %v542_v36, 0.0  ;;  %v584_v36 = vadd.s32 4294967295, %v6224_v5 }
  0x6e   : > { %v687_v1 = vpack.c.bf16 %v544_v55, %v676_v16 }
  0x6f   : > { %vm600_vm4 = vcmp.ge.s32.totalorder %v584_v36, 0 }
  0x72   : > { %3647 = vmatmul.mubr.msk.bf16.gmra.mrb[12].mxu0 %vm741_vm1, %v685_v40  ;;  %v545_v40 = vrot.slane %v4788_v7, 7 }
  0x73   : > { %1005 = vmatprep.mubr.bf16.mxu0 %v4566_v2 }
  0x74   : > { %v546_v31 = vsel %vm521_vm8, %v543_v8, %v545_v40  ;;  %v548_v7 = vsel %vm521_vm8, %v545_v40, %v547_v28 }
  0x75   : > { %v678_v52 = vsel %vm598_vm3, %v546_v31, 0.0 }
  0x76   : > { %v688_v55 = vpack.c.bf16 %v548_v7, %v678_v52  ;;  %v4521_v7 = vld [vmem:[%s6210_s2 + $0xa8] sm:$0xff]  }
  0x7a   : > { %3648 = vmatmul.mubr.msk.bf16.gmra.mrb[16].mxu0 %vm741_vm1, %v686_v51  ;;  %v549_v51 = vrot.slane %v4824_v35, 7 }
  0x7b   : > { %1015 = vmatprep.mubr.bf16.mxu0 %v4566_v2 }
  0x7c   : > { %v550_v8 = vsel %vm521_vm8, %v547_v28, %v549_v51  ;;  %v552_v16 = vsel %vm521_vm8, %v549_v51, %v551_v29 }
  0x7d   : > { %v680_v45 = vsel %vm600_vm4, %v550_v8, 0.0 }
  0x7e   : > { %v689_v40 = vpack.c.bf16 %v552_v16, %v680_v45 }
  0x82   : > { %3649 = vmatmul.mubr.msk.bf16.gmra.mrb[20].mxu0 %vm741_vm1, %v687_v1 }
  0x83   : > { %1025 = vmatprep.mubr.bf16.mxu0 %v4566_v2 }
  0x8a   : > { %3650 = vmatmul.mubr.msk.bf16.gmra.mrb[24].mxu0 %vm741_vm1, %v688_v55 }
  0x8b   : > { %1035 = vmatprep.mubr.bf16.mxu0 %v4566_v2 }
  0x92   : > { %3651 = vmatmul.mubr.msk.bf16.gmra.mrb[28].mxu0 %vm741_vm1, %v689_v40 }
  0x93   : > { %1308 = vmatprep.mubr.bf16.mxu0 %v4566_v2 }
  0x9a   : > { %3664 = vmatmul.mubr.msk.bf16.vlgmr.msra.gmra.mrb[0].mxu0 %vm741_vm1, %v1207_v39  ;;  %v4512_v39 = vld [vmem:[%s6210_s2 + $0xc8] sm:$0xff]  }
  0x9b   : > { %1318 = vmatprep.mubr.bf16.mxu0 %v4566_v2  ;;  %3885 = vmatprep.subr.bf16.mxu1 %v4512_v39 }
  0xa2   : > { %3665 = vmatmul.mubr.msk.bf16.gmra.mrb[4].mxu0 %vm741_vm1, %v1208_v3  ;;  %v4519_v3 = vld [vmem:[%s6210_s2 + $0xa0] sm:$0xff]  }
  0xa3   : > { %1328 = vmatprep.mubr.bf16.mxu0 %v4566_v2 }
  0xaa   : > { %3666 = vmatmul.mubr.msk.bf16.gmra.mrb[8].mxu0 %vm741_vm1, %v1209_v10  ;;  %v1425_v10 = vsub.s32 0, %v4661_v14 }
  0xab   : > { %1338 = vmatprep.mubr.bf16.mxu0 %v4566_v2 }
  0xb2   : > { %3667 = vmatmul.mubr.msk.bf16.gmra.mrb[12].mxu0 %vm741_vm1, %v1210_v23  ;;  %v5063_v23 = vrot.slane %v1421_v11, %v1425_v10 }
  0xb3   : > { %1348 = vmatprep.mubr.bf16.mxu0 %v4566_v2 }
  0xba   : > { %3668 = vmatmul.mubr.msk.bf16.gmra.mrb[16].mxu0 %vm741_vm1, %v1211_v27 }
  0xbb   : > { %1358 = vmatprep.mubr.bf16.mxu0 %v4566_v2 }
  0xc2   : > { %3669 = vmatmul.mubr.msk.bf16.gmra.mrb[20].mxu0 %vm741_vm1, %v1212_v50 }
  0xc3   : > { %1368 = vmatprep.mubr.bf16.mxu0 %v4566_v2 }
  0xca   : > { %3670 = vmatmul.mubr.msk.bf16.gmra.mrb[24].mxu0 %vm741_vm1, %v1213_v18 }
  0xcb   : > { %1378 = vmatprep.mubr.bf16.mxu0 %v4566_v2  ;;  %v4513_v2 = vld [vmem:[%s6210_s2 + $0x88] sm:$0xff]  }
  0xcc   : > { %3886 = vmatpush3.bf16.msra.mxu1 %v4513_v2 }
  0xcd   : > { %3887 = vmatprep.subr.bf16.mxu1 %v4514_v43 }
  0xd0   : > { %3888 = vmatpush3.bf16.msra.mxu1 %v4515_v49 }
  0xd1   : > { %3889 = vmatprep.subr.bf16.mxu1 %v4516_v60  ;;  %v4523_v60 = vld [vmem:[%s6210_s2 + $0xb0] sm:$0xff]  }
  0xd2   : > { %3671 = vmatmul.mubr.msk.bf16.gmra.mrb[28].mxu0 %vm741_vm1, %v1214_v9  ;;  %vm1753_vm1 = vcmask 916480  }
  0xd4   : > { %3890 = vmatpush3.bf16.msra.mxu1 %v4517_v62 }
  0xd5   : > { %3891 = vmatprep.subr.bf16.mxu1 %v4518_v0 }
  0xd8   : > { %3892 = vmatpush3.bf16.msra.mxu1 %v4519_v3 }
  0xd9   : > { %3893 = vmatprep.subr.bf16.mxu1 %v4520_v4 }
  0xdc   : > { %3894 = vmatpush3.bf16.msra.mxu1 %v4521_v7 }
  0xdd   : > { %3895 = vmatprep.subr.bf16.mxu1 %v4522_v34 }
  0xe0   : > { %3896 = vmatpush3.bf16.msra.mxu1 %v4523_v60 }
  0xe1   : > { %3897 = vmatprep.subr.bf16.mxu1 %v4524_v20 }
 0x16d   : > { %v1310_v27 = vpop.f32.mrb[0].mxu0 }
 0x16e   : > { %v1433_v32 = vadd.f32 %v5063_v23, %v1310_v27  ;;  %v1312_v35 = vpop.f32.mrb[1].mxu0 }
 0x16f   : > { %v1434_v46 = vadd.f32 %v5065_v25, %v1312_v35  ;;  %v1314_v50 = vpop.f32.mrb[2].mxu0  ;;  %v4525_v35 = vld [vmem:[%s6210_s2 + $0xb8] sm:$0xff]  }
 0x170   : > { %v1465_v58 = vmax.f32 %v1433_v32, 0.0  ;;  %v1435_v15 = vadd.f32 %v5063_v23, %v1314_v50  ;;  %v1316_v18 = vpop.f32.mrb[3].mxu0  ;;  %3898 = vmatpush3.bf16.msra.mxu1 %v4525_v35 }
 0x171   : > { %v1466_v33 = vmax.f32 %v1434_v46, 0.0  ;;  %v1436_v61 = vadd.f32 %v5065_v25, %v1316_v18 }
 0x172   : > { %v1467_v9 = vmax.f32 %v1435_v15, 0.0  ;;  %v1529_v28 = vrot.slane %v1465_v58, 1 }
 0x173   : > { %v1468_v1 = vmax.f32 %v1436_v61, 0.0  ;;  %v1532_v52 = vrot.slane %v1466_v33, 1 }
 0x174   : > { %v1530_v31 = vrot.slane %v1467_v9, 1 }
 0x175   : > { %v1533_v51 = vrot.slane %v1468_v1, 1  ;;  %v1320_v36 = vpop.f32.mrb[4].mxu0 }
 0x176   : > { %v1437_v55 = vadd.f32 %v5063_v23, %v1320_v36  ;;  %v1322_v29 = vpop.f32.mrb[5].mxu0  ;;  %v1531_v8 = vsel %vm1046_vm0, %v1529_v28, %v1530_v31 }
 0x177   : > { %v1438_v16 = vadd.f32 %v5065_v25, %v1322_v29  ;;  %v1324_v45 = vpop.f32.mrb[6].mxu0  ;;  %v1534_v40 = vsel %vm1046_vm0, %v1532_v52, %v1533_v51  ;;  %v5078_v17 = vmax.f32 %v1465_v58, %v1531_v8 }
 0x178   : > { %v1469_v39 = vmax.f32 %v1437_v55, 0.0  ;;  %v1439_v2 = vadd.f32 %v5063_v23, %v1324_v45  ;;  %v1326_v43 = vpop.f32.mrb[7].mxu0  ;;  %v5084_v49 = vmax.f32 %v1466_v33, %v1534_v40 }
 0x179   : > { %v1470_v62 = vmax.f32 %v1438_v16, 0.0  ;;  %v1440_v0 = vadd.f32 %v5065_v25, %v1326_v43 }
 0x17a   : > { %v1535_v3 = vrot.slane %v1469_v39, 1  ;;  %v1471_v4 = vmax.f32 %v1439_v2, 0.0 }
 0x17b   : > { %v1537_v10 = vrot.slane %v1470_v62, 1  ;;  %v1472_v11 = vmax.f32 %v1440_v0, 0.0 }
 0x17c   : > { %v1539_v27 = vrot.slane %v1471_v4, 1  ;;  %v1536_v32 = vsel %vm1046_vm0, %v1530_v31, %v1535_v3 }
 0x17d   : > { %v1541_v46 = vrot.slane %v1472_v11, 1  ;;  %v1330_v50 = vpop.f32.mrb[8].mxu0  ;;  %v1538_v58 = vsel %vm1046_vm0, %v1533_v51, %v1537_v10  ;;  %v5098_v15 = vmax.f32 %v1467_v9, %v1536_v32 }
 0x17e   : > { %v1441_v18 = vadd.f32 %v5063_v23, %v1330_v50  ;;  %v1332_v33 = vpop.f32.mrb[9].mxu0  ;;  %v5101_v61 = vmax.f32 %v1468_v1, %v1538_v58  ;;  %v1540_v28 = vsel %vm1046_vm0, %v1535_v3, %v1539_v27 }
 0x17f   : > { %v1442_v31 = vadd.f32 %v5065_v25, %v1332_v33  ;;  %v1334_v7 = vpop.f32.mrb[10].mxu0  ;;  %v1542_v52 = vsel %vm1046_vm0, %v1537_v10, %v1541_v46  ;;  %v5106_v36 = vmax.f32 %v1469_v39, %v1540_v28  ;;  %v4368_v43 = vpack.i.bf16 %v5098_v15, %v5078_v17 }
 0x180   : > { %v1473_v55 = vmax.f32 %v1441_v18, 0.0  ;;  %v1443_v9 = vadd.f32 %v5063_v23, %v1334_v7  ;;  %v1336_v51 = vpop.f32.mrb[11].mxu0  ;;  %v4363_v29 = vpack.i.bf16 %v5101_v61, %v5084_v49  ;;  %v5111_v8 = vmax.f32 %v1470_v62, %v1542_v52 }
 0x181   : > { %v1474_v1 = vmax.f32 %v1442_v31, 0.0  ;;  %v1444_v16 = vadd.f32 %v5065_v25, %v1336_v51 }
 0x182   : > { %v1543_v45 = vrot.slane %v1473_v55, 1  ;;  %v1475_v40 = vmax.f32 %v1443_v9, 0.0  ;;  %4364 = vrot.lane.b32.xlu0 %v4363_v29, %s4567_s15 }
 0x183   : > { %v1545_v34 = vrot.slane %v1474_v1, 1  ;;  %v1476_v39 = vmax.f32 %v1444_v16, 0.0  ;;  %v4526_v16 = vld [vmem:[%s6210_s2 + $0x40] sm:$0xff]  }
 0x184   : > { %v1547_v2 = vrot.slane %v1475_v40, 1  ;;  %v1544_v60 = vsel %vm1046_vm0, %v1539_v27, %v1543_v45  ;;  %3947 = vmatprep.subr.bf16.mxu1 %v4526_v16 }
 0x185   : > { %v1549_v0 = vrot.slane %v1476_v39, 1  ;;  %v1340_v3 = vpop.f32.mrb[12].mxu0  ;;  %v1546_v62 = vsel %vm1046_vm0, %v1541_v46, %v1545_v34  ;;  %v5119_v10 = vmax.f32 %v1471_v4, %v1544_v60 }
 0x186   : > { %v1445_v20 = vadd.f32 %v5063_v23, %v1340_v3  ;;  %4369 = vrot.lane.b32.xlu0 %v4368_v43, %s4567_s15  ;;  %v1342_v32 = vpop.f32.mrb[13].mxu0  ;;  %v5123_v35 = vmax.f32 %v1472_v11, %v1546_v62  ;;  %v1548_v50 = vsel %vm1046_vm0, %v1543_v45, %v1547_v2 }
 0x187   : > { %v1446_v58 = vadd.f32 %v5065_v25, %v1342_v32  ;;  %v1344_v18 = vpop.f32.mrb[14].mxu0  ;;  %v5127_v33 = vmax.f32 %v1473_v55, %v1548_v50  ;;  %v1550_v27 = vsel %vm1046_vm0, %v1545_v34, %v1549_v0  ;;  %v4378_v34 = vpack.i.bf16 %v5119_v10, %v5106_v36 }
 0x188   : > { %v1477_v28 = vmax.f32 %v1445_v20, 0.0  ;;  %v1447_v4 = vadd.f32 %v5063_v23, %v1344_v18  ;;  %v1346_v46 = vpop.f32.mrb[15].mxu0  ;;  %v4373_v31 = vpack.i.bf16 %v5123_v35, %v5111_v8  ;;  %v5133_v7 = vmax.f32 %v1474_v1, %v1550_v27 }
 0x189   : > { %v1478_v11 = vmax.f32 %v1446_v58, 0.0  ;;  %v1448_v52 = vadd.f32 %v5065_v25, %v1346_v46 }
 0x18a   : > { %v1551_v9 = vrot.slane %v1477_v28, 1  ;;  %v1479_v51 = vmax.f32 %v1447_v4, 0.0  ;;  %4374 = vrot.lane.b32.xlu1 %v4373_v31, %s4567_s15 }
 0x18b   : > { %v1553_v55 = vrot.slane %v1478_v11, 1  ;;  %v1480_v29 = vmax.f32 %v1448_v52, 0.0 }
 0x18c   : > { %v1555_v45 = vrot.slane %v1479_v51, 1  ;;  %v1552_v1 = vsel %vm1046_vm0, %v1547_v2, %v1551_v9 }
 0x18d   : > { %v1557_v43 = vrot.slane %v1480_v29, 1  ;;  %v1350_v60 = vpop.f32.mrb[16].mxu0  ;;  %v5143_v3 = vmax.f32 %v1475_v40, %v1552_v1  ;;  %v1554_v62 = vsel %vm1046_vm0, %v1549_v0, %v1553_v55 }
 0x18e   : > { %v1449_v20 = vadd.f32 %v5063_v23, %v1350_v60  ;;  %4379 = vrot.lane.b32.xlu1 %v4378_v34, %s4567_s15  ;;  %v1352_v32 = vpop.f32.mrb[17].mxu0  ;;  %v5148_v50 = vmax.f32 %v1476_v39, %v1554_v62  ;;  %v1556_v58 = vsel %vm1046_vm0, %v1551_v9, %v1555_v45 }
 0x18f   : > { %v1450_v18 = vadd.f32 %v5065_v25, %v1352_v32  ;;  %v1354_v27 = vpop.f32.mrb[18].mxu0  ;;  %v4388_v2 = vpack.i.bf16 %v5143_v3, %v5127_v33  ;;  %v5154_v40 = vmax.f32 %v1477_v28, %v1556_v58  ;;  %v1558_v0 = vsel %vm1046_vm0, %v1553_v55, %v1557_v43 }
 0x190   : > { %v1481_v4 = vmax.f32 %v1449_v20, 0.0  ;;  %v1451_v46 = vadd.f32 %v5063_v23, %v1354_v27  ;;  %v1356_v31 = vpop.f32.mrb[19].mxu0  ;;  %v4383_v39 = vpack.i.bf16 %v5148_v50, %v5133_v7  ;;  %v5160_v52 = vmax.f32 %v1478_v11, %v1558_v0 }
 0x191   : > { %v1482_v9 = vmax.f32 %v1450_v18, 0.0  ;;  %v1452_v16 = vadd.f32 %v5065_v25, %v1356_v31 }
 0x192   : > { %v1559_v34 = vrot.slane %v1481_v4, 1  ;;  %v1483_v1 = vmax.f32 %v1451_v46, 0.0  ;;  %4389 = vrot.lane.b32.xlu1 %v4388_v2, %s4567_s15  ;;  %4384 = vrot.lane.b32.xlu0 %v4383_v39, %s4567_s15 }
 0x193   : > { %v1561_v28 = vrot.slane %v1482_v9, 1  ;;  %v1484_v55 = vmax.f32 %v1452_v16, 0.0 }
 0x194   : > { %v1563_v60 = vrot.slane %v1483_v1, 1  ;;  %v1560_v62 = vsel %vm1046_vm0, %v1555_v45, %v1559_v34 }
 0x195   : > { %v1565_v20 = vrot.slane %v1484_v55, 1  ;;  %v1360_v32 = vpop.f32.mrb[20].mxu0  ;;  %v5166_v58 = vmax.f32 %v1479_v51, %v1560_v62  ;;  %v1562_v11 = vsel %vm1046_vm0, %v1557_v43, %v1561_v28 }
 0x196   : > { %v1453_v18 = vadd.f32 %v5063_v23, %v1360_v32  ;;  %v1362_v27 = vpop.f32.mrb[21].mxu0  ;;  %v5170_v0 = vmax.f32 %v1480_v29, %v1562_v11  ;;  %v1564_v2 = vsel %vm1046_vm0, %v1559_v34, %v1563_v60 }
 0x197   : > { %v1454_v46 = vadd.f32 %v5065_v25, %v1362_v27  ;;  %v1364_v31 = vpop.f32.mrb[22].mxu0  ;;  %v4398_v39 = vpack.i.bf16 %v5166_v58, %v5154_v40  ;;  %v5176_v45 = vmax.f32 %v1481_v4, %v1564_v2  ;;  %v1566_v51 = vsel %vm1046_vm0, %v1561_v28, %v1565_v20 }
 0x198   : > { %v1485_v16 = vmax.f32 %v1453_v18, 0.0  ;;  %v1455_v43 = vadd.f32 %v5063_v23, %v1364_v31  ;;  %v1366_v62 = vpop.f32.mrb[23].mxu0  ;;  %v4393_v29 = vpack.i.bf16 %v5170_v0, %v5160_v52  ;;  %v5182_v32 = vmax.f32 %v1482_v9, %v1566_v51 }
 0x199   : > { %v1486_v34 = vmax.f32 %v1454_v46, 0.0  ;;  %v1456_v11 = vadd.f32 %v5065_v25, %v1366_v62  ;;  %4399 = vrot.lane.b32.xlu1 %v4398_v39, %s4567_s15 }
 0x19a   : > { %v1567_v27 = vrot.slane %v1485_v16, 1  ;;  %v1487_v5 = vmax.f32 %v1455_v43, 0.0  ;;  %4394 = vrot.lane.b32.xlu0 %v4393_v29, %s4567_s15 }
 0x19b   : > { %v1569_v4 = vrot.slane %v1486_v34, 1  ;;  %v1488_v28 = vmax.f32 %v1456_v11, 0.0 }
 0x19c   : > { %v1571_v18 = vrot.slane %v1487_v5, 1  ;;  %v1568_v2 = vsel %vm1046_vm0, %v1563_v60, %v1567_v27 }
 0x19d   : > { %v1573_v31 = vrot.slane %v1488_v28, 1  ;;  %v1370_v30 = vpop.f32.mrb[24].mxu0  ;;  %v5188_v22 = vmax.f32 %v1483_v1, %v1568_v2  ;;  %v1570_v9 = vsel %vm1046_vm0, %v1565_v20, %v1569_v4 }
 0x19e   : > { %v1457_v46 = vadd.f32 %v5063_v23, %v1370_v30  ;;  %v1372_v51 = vpop.f32.mrb[25].mxu0  ;;  %v5192_v62 = vmax.f32 %v1484_v55, %v1570_v9  ;;  %v1572_v39 = vsel %vm1046_vm0, %v1567_v27, %v1571_v18 }
 0x19f   : > { %v1458_v43 = vadd.f32 %v5065_v25, %v1372_v51  ;;  %v1374_v29 = vpop.f32.mrb[26].mxu0  ;;  %v4408_v11 = vpack.i.bf16 %v5188_v22, %v5176_v45  ;;  %v5198_v60 = vmax.f32 %v1485_v16, %v1572_v39  ;;  %v1574_v1 = vsel %vm1046_vm0, %v1569_v4, %v1573_v31 }
 0x1a0   : > { %v1489_v2 = vmax.f32 %v1457_v46, 0.0  ;;  %v1459_v20 = vadd.f32 %v5063_v23, %v1374_v29  ;;  %v1376_v44 = vpop.f32.mrb[27].mxu0  ;;  %v4403_v30 = vpack.i.bf16 %v5192_v62, %v5182_v32  ;;  %v5204_v55 = vmax.f32 %v1486_v34, %v1574_v1 }
 0x1a1   : > { %v1490_v27 = vmax.f32 %v1458_v43, 0.0  ;;  %v1460_v9 = vadd.f32 %v5065_v25, %v1376_v44  ;;  %4409 = vrot.lane.b32.xlu1 %v4408_v11, %s4567_s15 }
 0x1a2   : > { %v1575_v51 = vrot.slane %v1489_v2, 1  ;;  %v1491_v24 = vmax.f32 %v1459_v20, 0.0  ;;  %4404 = vrot.lane.b32.xlu0 %v4403_v30, %s4567_s15 }
 0x1a3   : > { %v1577_v16 = vrot.slane %v1490_v27, 1  ;;  %v1492_v4 = vmax.f32 %v1460_v9, 0.0 }
 0x1a4   : > { %v1579_v46 = vrot.slane %v1491_v24, 1  ;;  %v1576_v39 = vsel %vm1046_vm0, %v1571_v18, %v1575_v51 }
 0x1a5   : > { %v1581_v29 = vrot.slane %v1492_v4, 1  ;;  %v1380_v56 = vpop.f32.mrb[28].mxu0  ;;  %v5210_v6 = vmax.f32 %v1487_v5, %v1576_v39  ;;  %v1578_v34 = vsel %vm1046_vm0, %v1573_v31, %v1577_v16 }
 0x1a6   : > { %v1461_v43 = vadd.f32 %v5063_v23, %v1380_v56  ;;  %v1382_v44 = vpop.f32.mrb[29].mxu0  ;;  %v5214_v1 = vmax.f32 %v1488_v28, %v1578_v34  ;;  %v1580_v11 = vsel %vm1046_vm0, %v1575_v51, %v1579_v46 }
 0x1a7   : > { %v1462_v20 = vadd.f32 %v5065_v25, %v1382_v44  ;;  %v1384_v30 = vpop.f32.mrb[30].mxu0  ;;  %v4418_v9 = vpack.i.bf16 %v5210_v6, %v5198_v60  ;;  %v5220_v18 = vmax.f32 %v1489_v2, %v1580_v11  ;;  %v1582_v5 = vsel %vm1046_vm0, %v1577_v16, %v1581_v29 }
 0x1a8   : > { %v1493_v39 = vmax.f32 %v1461_v43, 0.0  ;;  %v1463_v31 = vadd.f32 %v5063_v23, %v1384_v30  ;;  %v1386_v54 = vpop.f32.mrb[31].mxu0  ;;  %v4413_v56 = vpack.i.bf16 %v5214_v1, %v5204_v55  ;;  %v5226_v28 = vmax.f32 %v1490_v27, %v1582_v5 }
 0x1a9   : > { %v1494_v51 = vmax.f32 %v1462_v20, 0.0  ;;  %v1464_v34 = vadd.f32 %v5065_v25, %v1386_v54  ;;  %4419 = vrot.lane.b32.xlu1 %v4418_v9, %s4567_s15 }
 0x1aa   : > { %v1583_v44 = vrot.slane %v1493_v39, 1  ;;  %v1495_v21 = vmax.f32 %v1463_v31, 0.0  ;;  %4414 = vrot.lane.b32.xlu0 %v4413_v56, %s4567_s15 }
 0x1ab   : > { %v1585_v2 = vrot.slane %v1494_v51, 1  ;;  %v1496_v16 = vmax.f32 %v1464_v34, 0.0 }
 0x1ac   : > { %v1587_v43 = vrot.slane %v1495_v21, 1  ;;  %v1584_v23 = vsel %vm1046_vm0, %v1579_v46, %v1583_v44 }
 0x1ad   : > { %v1589_v11 = vrot.slane %v1496_v16, 1  ;;  %v5232_v30 = vmax.f32 %v1491_v24, %v1584_v23  ;;  %v1586_v27 = vsel %vm1046_vm0, %v1581_v29, %v1585_v2 }
 0x1ae   : > { %v1623_v20 = vsel %vm1046_vm0, %v1587_v43, 0.0  ;;  %v5236_v5 = vmax.f32 %v1492_v4, %v1586_v27  ;;  %v1588_v54 = vsel %vm1046_vm0, %v1583_v44, %v1587_v43 }
 0x1af   : > { %v5239_v25 = vmax.f32 %v1495_v21, %v1623_v20  ;;  %v1624_v9 = vsel %vm1046_vm0, %v1589_v11, 0.0  ;;  %v4428_v31 = vpack.i.bf16 %v5232_v30, %v5220_v18  ;;  %v5244_v56 = vmax.f32 %v1493_v39, %v1588_v54 }
 0x1b0   : > { %v5246_v46 = vmax.f32 %v1496_v16, %v1624_v9  ;;  %v4423_v24 = vpack.i.bf16 %v5236_v5, %v5226_v28  ;;  %v1590_v29 = vsel %vm1046_vm0, %v1585_v2, %v1589_v11  ;;  %vm2590_vm0 = vcmask 1045504  }
 0x1b1   : > { %4429 = vrot.lane.b32.xlu1 %v4428_v31, %s4567_s15  ;;  %v5252_v4 = vmax.f32 %v1494_v51, %v1590_v29  ;;  %v4438_v21 = vpack.i.bf16 %v5239_v25, %v5244_v56 }
 0x1b2   : > { %4424 = vrot.lane.b32.xlu0 %v4423_v24, %s4567_s15 }
 0x1b3   : > { %v4433_v39 = vpack.i.bf16 %v5246_v46, %v5252_v4 }
 0x1b5   : > { %4439 = vrot.lane.b32.xlu1 %v4438_v21, %s4567_s15 }
 0x1b6   : > { %4434 = vrot.lane.b32.xlu0 %v4433_v39, %s4567_s15 }
 0x1f4   : > { %v4365_v34 = vpop.permute.xlu0 %4364 }
 0x1f5   : > { %v4367_v44 = vunpack.i.h.bf16 %v4365_v34  ;;  %v4366_v2 = vunpack.i.l.bf16 %v4365_v34 }
 0x1f7   : > { %v1803_v16 = vsel %vm1753_vm1, %v4367_v44, 0.0  ;;  %v1802_v51 = vsel %vm1753_vm1, %v4366_v2, 0.0 }
 0x1f8   : > { %v4370_v43 = vpop.permute.xlu0 %4369  ;;  %v5264_v23 = vmax.f32 %v5084_v49, %v1802_v51  ;;  %v5267_v11 = vmax.f32 %v5101_v61, %v1803_v16 }
 0x1f9   : > { %v4372_v27 = vunpack.i.h.bf16 %v4370_v43  ;;  %v4371_v20 = vunpack.i.l.bf16 %v4370_v43 }
 0x1fa   : > { %v2156_v54 = vpack.c.bf16 %v5267_v11, %v5264_v23  ;;  %v2594_v9 = vrot.slane %v5264_v23, 2  ;;  %v6233_v29 = vrot.slane %v5267_v11, 2  ;;  %v6243_v47 = vrot.slane %v5267_v11, 6 }
 0x1fb   : > { %v1754_v31 = vsel %vm1753_vm1, %v4371_v20, %v4366_v2  ;;  %v1755_v24 = vsel %vm1753_vm1, %v4372_v27, %v4367_v44 }
 0x1fc   : > { %v1818_v49 = vmax.f32 %v5078_v17, %v1754_v31  ;;  %v5277_v21 = vmax.f32 %v5098_v15, %v1755_v24  ;;  %2332 = vmatprep.mubr.bf16.mxu1 %v2156_v54  ;;  %v4375_v61 = vpop.permute.xlu1 %4374  ;;  %v5282_v16 = vsel %vm2590_vm0, %v2594_v9, %v6233_v29  ;;  %v4527_v17 = vld [vmem:[%s6210_s2] sm:$0xff]   ;;  %v4528_v54 = vld [vmem:[%s6210_s2 + $0x48] sm:$0xff]  }
 0x1fd   : > { %v4377_v39 = vunpack.i.h.bf16 %v4375_v61  ;;  %v4376_v34 = vunpack.i.l.bf16 %v4375_v61  ;;  %6274 = vst [vmem:[#allocation13_spill] sm:$0xff] %v5282_v16 }
 0x1fe   : > { %v1883_v51 = vrot.slane %v1818_v49, 6  ;;  %v6236_v2 = vrot.slane %v5277_v21, 6  ;;  %v2591_v44 = vrot.slane %v1818_v49, 2  ;;  %v2592_v43 = vrot.slane %v5277_v21, 2 }
 0x1ff   : > { %v1805_v15 = vsel %vm1753_vm1, %v4377_v39, 0.0  ;;  %v1804_v27 = vsel %vm1753_vm1, %v4376_v34, 0.0  ;;  %v2155_v20 = vpack.c.bf16 %v5277_v21, %v1818_v49 }
 0x200   : > { %v5298_v9 = vsel %vm1882_vm5, %v1883_v51, %v6236_v2  ;;  %v5301_v31 = vsel %vm1882_vm5, 0.0, %v1883_v51  ;;  %v5304_v24 = vsel %vm2590_vm0, %v2591_v44, %v2592_v43  ;;  %v5307_v61 = vmax.f32 %v5123_v35, %v1805_v15  ;;  %v4380_v29 = vpop.permute.xlu1 %4379  ;;  %v4529_v51 = vld [vmem:[%s6210_s2 + $0x8] sm:$0xff]   ;;  %v4530_v15 = vld [vmem:[%s6210_s2 + $0x50] sm:$0xff]  }
 0x201   : > { %6275 = vst [vmem:[#allocation14_spill] sm:$0xff] %v5304_v24  ;;  %v5312_v53 = vmax.f32 %v5111_v8, %v1804_v27  ;;  %2333 = vmatmul.mubr.bf16.vlgmr.msra.gmra.mrb[0].mxu1 %v2155_v20  ;;  %v4382_v26 = vunpack.i.h.bf16 %v4380_v29  ;;  %v4381_v2 = vunpack.i.l.bf16 %v4380_v29 }
 0x202   : > { %3948 = vmatpush3.bf16.msra.mxu1 %v4527_v17 }
 0x203   : > { %v1756_v44 = vsel %vm1753_vm1, %v4381_v2, %v4376_v34  ;;  %v1757_v35 = vsel %vm1753_vm1, %v4382_v26, %v4377_v39  ;;  %3949 = vmatprep.subr.bf16.mxu1 %v4528_v54  ;;  %v2158_v29 = vpack.c.bf16 %v5307_v61, %v5312_v53 }
 0x204   : > { %v5323_v8 = vmax.f32 %v5106_v36, %v1756_v44  ;;  %v4390_v17 = vpop.permute.xlu1 %4389  ;;  %v4385_v27 = vpop.permute.xlu0 %4384  ;;  %v5328_v20 = vmax.f32 %v5119_v10, %v1757_v35  ;;  %v4531_v36 = vld [vmem:[%s6210_s2 + $0x10] sm:$0xff]   ;;  %v4532_v10 = vld [vmem:[%s6210_s2 + $0x58] sm:$0xff]  }
 0x205   : > { %v4387_v49 = vunpack.i.h.bf16 %v4385_v27  ;;  %v4386_v34 = vunpack.i.l.bf16 %v4385_v27  ;;  %2340 = vmatprep.mubr.bf16.mxu1 %v2158_v29  ;;  %v4392_v39 = vunpack.i.h.bf16 %v4390_v17  ;;  %v4391_v2 = vunpack.i.l.bf16 %v4390_v17 }
 0x206   : > { %v6238_v26 = vrot.slane %v5323_v8, 2  ;;  %3950 = vmatpush3.bf16.msra.mxu1 %v4529_v51 }
 0x207   : > { %v1807_v54 = vsel %vm1753_vm1, %v4387_v49, 0.0  ;;  %v1806_v44 = vsel %vm1753_vm1, %v4386_v34, 0.0  ;;  %3951 = vmatprep.subr.bf16.mxu1 %v4530_v15  ;;  %v2157_v15 = vpack.c.bf16 %v5328_v20, %v5323_v8  ;;  %v1759_v27 = vsel %vm1753_vm1, %v4392_v39, %v4387_v49 }
 0x208   : > { %v5342_v35 = vsel %vm2590_vm0, %v2592_v43, %v6238_v26  ;;  %v5345_v51 = vmax.f32 %v5148_v50, %v1807_v54  ;;  %v5350_v17 = vmax.f32 %v5133_v7, %v1806_v44  ;;  %v1758_v63 = vsel %vm1753_vm1, %v4391_v2, %v4386_v34  ;;  %v4533_v43 = vld [vmem:[%s6210_s2 + $0x18] sm:$0xff]   ;;  %v4534_v7 = vld [vmem:[%s6210_s2 + $0x60] sm:$0xff]  }
 0x209   : > { %6276 = vst [vmem:[#allocation15_spill] sm:$0xff] %v5342_v35  ;;  %2341 = vmatmul.mubr.bf16.gmra.mrb[4].mxu1 %v2157_v15  ;;  %v5365_v49 = vmax.f32 %v5143_v3, %v1759_v27  ;;  %v5368_v34 = vmax.f32 %v5127_v33, %v1758_v63  ;;  %v4536_v63 = vld [vmem:[%s6210_s2 + $0x68] sm:$0xff]   ;;  %v1884_v35 = vrot.slane %v5264_v23, 6 }
 0x20a   : > { %3952 = vmatpush3.bf16.msra.mxu1 %v4531_v36  ;;  %v2160_v54 = vpack.c.bf16 %v5345_v51, %v5350_v17  ;;  %v2611_v16 = vrot.slane %v5345_v51, 2 }
 0x20b   : > { %v4400_v50 = vpop.permute.xlu1 %4399  ;;  %3953 = vmatprep.subr.bf16.mxu1 %v4532_v10  ;;  %v4535_v10 = vld [vmem:[%s6210_s2 + $0x20] sm:$0xff]   ;;  %v2159_v27 = vpack.c.bf16 %v5365_v49, %v5368_v34 }
 0x20c   : > { %v4395_v44 = vpop.permute.xlu0 %4394  ;;  %v4402_v36 = vunpack.i.h.bf16 %v4400_v50  ;;  %v4401_v15 = vunpack.i.l.bf16 %v4400_v50  ;;  %2348 = vmatprep.mubr.bf16.mxu1 %v2160_v54 }
 0x20d   : > { %v4397_v39 = vunpack.i.h.bf16 %v4395_v44  ;;  %v4396_v2 = vunpack.i.l.bf16 %v4395_v44 }
 0x20e   : > { %3954 = vmatpush3.bf16.msra.mxu1 %v4533_v43 }
 0x20f   : > { %v1809_v29 = vsel %vm1753_vm1, %v4397_v39, 0.0  ;;  %v1808_v26 = vsel %vm1753_vm1, %v4396_v2, 0.0  ;;  %3955 = vmatprep.subr.bf16.mxu1 %v4534_v7  ;;  %v1761_v43 = vsel %vm1753_vm1, %v4402_v36, %v4397_v39  ;;  %v1760_v50 = vsel %vm1753_vm1, %v4401_v15, %v4396_v2  ;;  %v4537_v7 = vld [vmem:[%s6210_s2 + $0x28] sm:$0xff]  }
 0x210   : > { %v5379_v33 = vmax.f32 %v5170_v0, %v1809_v29  ;;  %v5382_v3 = vmax.f32 %v5160_v52, %v1808_v26  ;;  %v4538_v52 = vld [vmem:[%s6210_s2 + $0x70] sm:$0xff]   ;;  %v2603_v0 = vrot.slane %v5307_v61, 2  ;;  %v2599_v26 = vrot.slane %v5312_v53, 2 }
 0x211   : > { %2349 = vmatmul.mubr.bf16.gmra.mrb[8].mxu1 %v2159_v27  ;;  %v5399_v39 = vmax.f32 %v5166_v58, %v1761_v43  ;;  %v5402_v2 = vmax.f32 %v5154_v40, %v1760_v50  ;;  %v4539_v27 = vld [vmem:[%s6210_s2 + $0x30] sm:$0xff]   ;;  %v4540_v40 = vld [vmem:[%s6210_s2 + $0x78] sm:$0xff]  }
 0x212   : > { %3956 = vmatpush3.bf16.msra.mxu1 %v4535_v10  ;;  %v2162_v29 = vpack.c.bf16 %v5379_v33, %v5382_v3 }
 0x213   : > { %v4410_v54 = vpop.permute.xlu1 %4409  ;;  %3957 = vmatprep.subr.bf16.mxu1 %v4536_v63  ;;  %v2161_v50 = vpack.c.bf16 %v5399_v39, %v5402_v2 }
 0x214   : > { %v4405_v44 = vpop.permute.xlu0 %4404  ;;  %v4412_v10 = vunpack.i.h.bf16 %v4410_v54  ;;  %v4411_v63 = vunpack.i.l.bf16 %v4410_v54  ;;  %2356 = vmatprep.mubr.bf16.mxu1 %v2162_v29 }
 0x215   : > { %v4407_v36 = vunpack.i.h.bf16 %v4405_v44  ;;  %v4406_v15 = vunpack.i.l.bf16 %v4405_v44 }
 0x216   : > { %3958 = vmatpush3.bf16.msra.mxu1 %v4537_v7  ;;  %v6277_v7 = vrot.slane %v5267_v11, 2 }
 0x217   : > { %v1811_v57 = vsel %vm1753_vm1, %v4407_v36, 0.0  ;;  %v1810_v24 = vsel %vm1753_vm1, %v4406_v15, 0.0  ;;  %3959 = vmatprep.subr.bf16.mxu1 %v4538_v52  ;;  %v5426_v52 = vsel %vm2590_vm0, %v2599_v26, %v2603_v0  ;;  %v1763_v29 = vsel %vm1753_vm1, %v4412_v10, %v4407_v36 }
 0x218   : > { %v5413_v58 = vmax.f32 %v5192_v62, %v1811_v57  ;;  %v5416_v43 = vmax.f32 %v5182_v32, %v1810_v24  ;;  %v5423_v54 = vsel %vm2590_vm0, %v6277_v7, %v2599_v26  ;;  %6279 = vst [vmem:[#allocation17_spill] sm:$0xff] %v5426_v52  ;;  %v1762_v44 = vsel %vm1753_vm1, %v4411_v63, %v4406_v15  ;;  %v4541_v57 = vld [vmem:[%s6210_s2 + $0x38] sm:$0xff]   ;;  %v4542_v62 = vld [vmem:[%s6210_s2 + $0x140] sm:$0xff]  }
 0x219   : > { %6278 = vst [vmem:[#allocation16_spill] sm:$0xff] %v5423_v54  ;;  %2357 = vmatmul.mubr.bf16.gmra.mrb[12].mxu1 %v2161_v50  ;;  %v5440_v15 = vmax.f32 %v5188_v22, %v1763_v29  ;;  %v5443_v10 = vmax.f32 %v5176_v45, %v1762_v44 }
 0x21a   : > { %3960 = vmatpush3.bf16.msra.mxu1 %v4539_v27  ;;  %v2164_v26 = vpack.c.bf16 %v5413_v58, %v5416_v43 }
 0x21b   : > { %v4420_v32 = vpop.permute.xlu1 %4419  ;;  %3961 = vmatprep.subr.bf16.mxu1 %v4540_v40  ;;  %v2163_v29 = vpack.c.bf16 %v5440_v15, %v5443_v10 }
 0x21c   : > { %v4415_v36 = vpop.permute.xlu0 %4414  ;;  %v4422_v50 = vunpack.i.h.bf16 %v4420_v32  ;;  %v4421_v40 = vunpack.i.l.bf16 %v4420_v32  ;;  %2364 = vmatprep.mubr.bf16.mxu1 %v2164_v26  ;;  %v5471_v26 = vsel %vm1882_vm5, %v1884_v35, %v6243_v47 }
 0x21d   : > { %v4417_v63 = vunpack.i.h.bf16 %v4415_v36  ;;  %v4416_v27 = vunpack.i.l.bf16 %v4415_v36 }
 0x21e   : > { %3962 = vmatpush3.bf16.msra.mxu1 %v4541_v57  ;;  %v6281_v57 = vrot.slane %v5350_v17, 2 }
 0x21f   : > { %v1813_v7 = vsel %vm1753_vm1, %v4417_v63, 0.0  ;;  %v1812_v24 = vsel %vm1753_vm1, %v4416_v27, 0.0  ;;  %4011 = vmatprep.subr.bf16.mxu1 %v4542_v62  ;;  %v1765_v23 = vsel %vm1753_vm1, %v4422_v50, %v4417_v63  ;;  %v1764_v62 = vsel %vm1753_vm1, %v4421_v40, %v4416_v27 }
 0x220   : > { %v5450_v22 = vmax.f32 %v5214_v1, %v1813_v7  ;;  %v5453_v45 = vmax.f32 %v5204_v55, %v1812_v24  ;;  %v5462_v32 = vsel %vm2590_vm0, %v2603_v0, %v6281_v57  ;;  %v5474_v36 = vmax.f32 %v5210_v6, %v1765_v23 }
 0x221   : > { %6282 = vst [vmem:[#allocation19_spill] sm:$0xff] %v5462_v32  ;;  %2365 = vmatmul.mubr.bf16.gmra.mrb[16].mxu1 %v2163_v29  ;;  %v5477_v0 = vmax.f32 %v5198_v60, %v1764_v62  ;;  %v5480_v7 = vsel %vm1882_vm5, 0.0, %v1884_v35  ;;  %v6285_v60 = vand.u32 15, %v4661_v14  ;;  %v2605_v29 = vrot.slane %v5368_v34, 2 }
 0x222   : > { %6280 = vst [vmem:[#allocation18_spill] sm:$0xff] %v5450_v22  ;;  %v2166_v55 = vpack.c.bf16 %v5450_v22, %v5453_v45  ;;  %6283 = vst [vmem:[#allocation20_spill] sm:$0xff] %v5474_v36  ;;  %v2633_v42 = vrot.slane %v5474_v36, 2  ;;  %v2635_v19 = vrot.slane %v5450_v22, 2 }
 0x223   : > { %v4430_v1 = vpop.permute.xlu1 %4429  ;;  %6284 = vst [vmem:[#allocation21_spill] sm:$0xff] %v5477_v0  ;;  %v5488_v62 = vadd.s32 4294967294, %v6285_v60  ;;  %v2165_v35 = vpack.c.bf16 %v5474_v36, %v5477_v0  ;;  %v2629_v41 = vrot.slane %v5477_v0, 2  ;;  %v6290_v0 = vrot.slane %v5323_v8, 2 }
 0x224   : > { %v4425_v24 = vpop.permute.xlu0 %4424  ;;  %v4432_v27 = vunpack.i.h.bf16 %v4430_v1  ;;  %v4431_v40 = vunpack.i.l.bf16 %v4430_v1  ;;  %2372 = vmatprep.mubr.bf16.mxu1 %v2166_v55 }
 0x225   : > { %v4427_v63 = vunpack.i.h.bf16 %v4425_v24  ;;  %v4426_v50 = vunpack.i.l.bf16 %v4425_v24  ;;  %v6286_v24 = vand.u32 15, %v4868_v38  ;;  %v2601_v38 = vrot.slane %v5328_v20, 2 }
 0x226   : > { %vm1995_vm6 = vcmp.ge.s32.totalorder %v5488_v62, 0  ;;  %v1891_v62 = vrot.slane %v5312_v53, 6  ;;  %v6297_v53 = vpack.c.bf16 %v5471_v26, %v5480_v7 }
 0x227   : > { %v1815_v57 = vsel %vm1753_vm1, %v4427_v63, 0.0  ;;  %v1814_v44 = vsel %vm1753_vm1, %v4426_v50, 0.0  ;;  %v4440_v6 = vpop.permute.xlu1 %4439  ;;  %v5492_v1 = vadd.s32 4294967294, %v6286_v24  ;;  %v1767_v52 = vsel %vm1753_vm1, %v4432_v27, %v4427_v63  ;;  %vm5613_vm8 = vmpackc.low %vm4568_vm7, %vm1995_vm6 }
 0x228   : > { %v4435_v23 = vpop.permute.xlu0 %4434  ;;  %v5500_v32 = vmax.f32 %v5236_v5, %v1815_v57  ;;  %v1766_v14 = vsel %vm1753_vm1, %v4431_v40, %v4426_v50  ;;  %v5504_v60 = vmax.f32 %v5226_v28, %v1814_v44  ;;  %v2609_v24 = vrot.slane %v5365_v49, 2 }
 0x229   : > { %v4437_v55 = vunpack.i.h.bf16 %v4435_v23  ;;  %v4436_v47 = vunpack.i.l.bf16 %v4435_v23  ;;  %v4441_v23 = vunpack.i.l.bf16 %v4440_v6  ;;  %2373 = vmatmul.mubr.bf16.gmra.mrb[20].mxu1 %v2165_v35  ;;  %v4442_v54 = vunpack.i.h.bf16 %v4440_v6 }
 0x22a   : > { %6287 = vst [vmem:[#allocation22_spill] sm:$0xff] %v5500_v32  ;;  %v5513_v50 = vmax.f32 %v5232_v30, %v1767_v52  ;;  %v5516_v28 = vmax.f32 %v5220_v18, %v1766_v14  ;;  %v2617_v40 = vrot.slane %v5399_v39, 2  ;;  %v2619_v57 = vrot.slane %v5379_v33, 2 }
 0x22b   : > { %v1817_v63 = vsel %vm1753_vm1, %v4437_v55, 0.0  ;;  %v1816_v5 = vsel %vm1753_vm1, %v4436_v47, 0.0  ;;  %v2613_v6 = vrot.slane %v5402_v2, 2  ;;  %v2168_v35 = vpack.c.bf16 %v5500_v32, %v5504_v60 }
 0x22c   : > { %6288 = vst [vmem:[#allocation23_spill] sm:$0xff] %v5513_v50  ;;  %v5519_v44 = vmax.f32 %v5246_v46, %v1817_v63  ;;  %v5522_v27 = vmax.f32 %v5252_v4, %v1816_v5  ;;  %v2615_v18 = vrot.slane %v5382_v3, 2  ;;  %v2625_v30 = vrot.slane %v5440_v15, 2 }
 0x22d   : > { %v2627_v46 = vrot.slane %v5413_v58, 2  ;;  %v1768_v4 = vsel %vm1753_vm1, %v4441_v23, %v4436_v47  ;;  %v2621_v52 = vrot.slane %v5443_v10, 2  ;;  %v2623_v14 = vrot.slane %v5416_v43, 2  ;;  %2380 = vmatprep.mubr.bf16.mxu1 %v2168_v35 }
 0x22e   : > { %6289 = vst [vmem:[#allocation24_spill] sm:$0xff] %v5519_v44  ;;  %v1769_v63 = vsel %vm1753_vm1, %v4442_v54, %v4437_v55  ;;  %v2170_v5 = vpack.c.bf16 %v5519_v44, %v5522_v27  ;;  %v2167_v37 = vpack.c.bf16 %v5513_v50, %v5516_v28  ;;  %v2631_v47 = vrot.slane %v5453_v45, 2 }
 0x22f   : > { %v2641_v23 = vrot.slane %v5513_v50, 2  ;;  %v2643_v13 = vrot.slane %v5500_v32, 2  ;;  %v5548_v54 = vmax.f32 %v5244_v56, %v1768_v4  ;;  %v2637_v55 = vrot.slane %v5516_v28, 2 }
 0x230   : > { %v2639_v35 = vrot.slane %v5504_v60, 2  ;;  %v5553_v36 = vmax.f32 %v5239_v25, %v1769_v63  ;;  %v5558_v22 = vsel %vm2590_vm0, %v6290_v0, %v2601_v38  ;;  %v2651_v50 = vrot.slane %v5519_v44, 2 }
 0x231   : > { %2381 = vmatmul.mubr.bf16.gmra.mrb[24].mxu1 %v2167_v37  ;;  %v5562_v32 = vsel %vm2590_vm0, %v2601_v38, %v2605_v29  ;;  %v6291_v56 = vrot.slane %v5350_v17, 2  ;;  %v5570_v25 = vsel %vm2590_vm0, %v2611_v16, %v2615_v18  ;;  %v5577_v63 = vsel %vm2590_vm0, %v2605_v29, %v2609_v24 }
 0x232   : > { %2388 = vmatprep.mubr.bf16.mxu1 %v2170_v5  ;;  %6292 = vst [vmem:[#allocation25_spill] sm:$0xff] %v5577_v63  ;;  %v5580_v38 = vsel %vm2590_vm0, %v2609_v24, %v2613_v6  ;;  %v2645_v5 = vrot.slane %v5548_v54, 2  ;;  %v5589_v44 = vsel %vm2590_vm0, %v2619_v57, %v2623_v14  ;;  %v5594_v29 = vsel %vm2590_vm0, %v2613_v6, %v2617_v40 }
 0x233   : > { %v5567_v4 = vsel %vm2590_vm0, %v6291_v56, %v2611_v16  ;;  %v5586_v16 = vsel %vm2590_vm0, %v2615_v18, %v2619_v57  ;;  %6293 = vst [vmem:[#allocation26_spill] sm:$0xff] %v5594_v29  ;;  %v5597_v24 = vsel %vm2590_vm0, %v2617_v40, %v2621_v52  ;;  %v5600_v37 = vsel %vm2590_vm0, %v2623_v14, %v2627_v46 }
 0x234   : > { %6294 = vst [vmem:[#allocation27_spill] sm:$0xff] %v5597_v24  ;;  %v2647_v56 = vrot.slane %v5522_v27, 2  ;;  %v2169_v18 = vpack.c.bf16 %v5553_v36, %v5548_v54  ;;  %v5608_v63 = vsel %vm2590_vm0, %v2627_v46, %v2631_v47  ;;  %v5620_v14 = vsel %vm2590_vm0, %v2621_v52, %v2625_v30 }
 0x235   : > { %v5623_v0 = vsel %vm2590_vm0, %v2625_v30, %v2629_v41  ;;  %v5626_v46 = vsel %vm2590_vm0, %v2631_v47, %v2635_v19  ;;  %v1895_v57 = vrot.slane %v5307_v61, 6  ;;  %v5633_v24 = vsel %vm2590_vm0, %v2635_v19, %v2639_v35 }
 0x236   : > { %v5638_v30 = vsel %vm2590_vm0, %v2629_v41, %v2633_v42  ;;  %v5641_v47 = vsel %vm2590_vm0, %v2633_v42, %v2637_v55  ;;  %v5644_v61 = vsel %vm2590_vm0, %v2639_v35, %v2643_v13  ;;  %v5659_v42 = vsel %vm2590_vm0, %v2637_v55, %v2641_v23 }
 0x237   : > { %v5662_v35 = vsel %vm2590_vm0, %v2641_v23, %v2645_v5  ;;  %v5665_v26 = vsel %vm2590_vm0, %v2647_v56, %v2651_v50  ;;  %vm1997_vm9 = vcmp.ge.s32.totalorder %v5492_v1, 0  ;;  %v1896_v55 = vsel %vm1882_vm5, %v1891_v62, %v1895_v57  ;;  %v4543_v1 = vld [vmem:[%s6210_s2 + $0x100] sm:$0xff]  }
 0x238   : > { %6298 = vst [vmem:[#allocation28_spill] sm:$0xff] %v5665_v26  ;;  %vm5684_vm10 = vmpackc.low %vm4568_vm7, %vm1997_vm9  ;;  %v1889_v19 = vrot.slane %v5323_v8, 6  ;;  %v1893_v52 = vrot.slane %v5328_v20, 6  ;;  %v6303_v26 = vpack.c.bf16 %v5298_v9, %v5301_v31  ;;  %v4545_v8 = vld [vmem:[%s6210_s2 + $0x108] sm:$0xff]   ;;  %v4546_v20 = vld [vmem:[%s6210_s2 + $0x150] sm:$0xff]  }
 0x239   : > { %2389 = vmatmul.mubr.bf16.gmra.mrb[28].mxu1 %v2169_v18  ;;  %v5654_v18 = vsel %vm2590_vm0, %v2643_v13, %v2647_v56  ;;  %v5671_v13 = vsel %vm2590_vm0, %v2651_v50, 0.0  ;;  %v2649_v56 = vrot.slane %v5553_v36, 2 }
 0x23a   : > { %3738 = vmatprep.mubr.msk.bf16.mxu1 %vm5613_vm8, %v6297_v53  ;;  %v6299_v53 = vrot.slane %v5267_v11, 6  ;;  %v6302_v11 = vand.u32 15, %v4893_v59  ;;  %v1903_v59 = vrot.slane %v5345_v51, 6  ;;  %v6304_v51 = vrot.slane %v5277_v21, 6  ;;  %v4548_v21 = vld [vmem:[%s6210_s2 + $0x158] sm:$0xff]  }
 0x23b   : > { %v5697_v23 = vsel %vm2590_vm0, %v2649_v56, 0.0  ;;  %v1894_v31 = vsel %vm1882_vm5, %v1889_v19, %v1893_v52 }
 0x23c   : > { %v1892_v41 = vsel %vm1882_vm5, %v6299_v53, %v1891_v62  ;;  %v1983_v50 = vadd.s32 4294967294, %v6302_v11  ;;  %v4544_v62 = vld [vmem:[%s6210_s2 + $0x148] sm:$0xff]   ;;  %v5694_v53 = vsel %vm2590_vm0, %v2645_v5, %v2649_v56  ;;  %v1899_v11 = vrot.slane %v5350_v17, 6 }
 0x23d   : > { %v3743_v29 = vpack.c.bf16 %v1896_v55, %v1892_v41  ;;  %v3878_v6 = vpack.c.bf16 %v5697_v23, %v5694_v53  ;;  %v1890_v9 = vsel %vm1882_vm5, %v6304_v51, %v1889_v19  ;;  %v1897_v19 = vrot.slane %v5368_v34, 6 }
 0x23e   : > { %vm1999_vm11 = vcmp.ge.s32.totalorder %v1983_v50, 0  ;;  %v1900_v17 = vsel %vm1882_vm5, %v1895_v57, %v1899_v11  ;;  %v1904_v5 = vsel %vm1882_vm5, %v1899_v11, %v1903_v59  ;;  %v3746_v40 = vpack.c.bf16 %v1894_v31, %v1890_v9 }
 0x23f   : > { %vm5728_vm12 = vmpackc.low %vm4568_vm7, %vm1999_vm11  ;;  %v1901_v57 = vrot.slane %v5365_v49, 6  ;;  %v6307_v55 = vand.u32 15, %v4914_v48  ;;  %v1907_v50 = vrot.slane %v5382_v3, 6  ;;  %v4549_v49 = vld [vmem:[%s6210_s2 + $0x118] sm:$0xff]   ;;  %v4550_v48 = vld [vmem:[%s6210_s2 + $0x160] sm:$0xff]   ;;  %v1898_v34 = vsel %vm1882_vm5, %v1893_v52, %v1897_v19 }
 0x240   : > { %v4552_v52 = vld [vmem:[%s6210_s2 + $0x168] sm:$0xff]   ;;  %v6310_v9 = vand.u32 15, %v4932_v12  ;;  %v4554_v12 = vld [vmem:[%s6210_s2 + $0x170] sm:$0xff]  }
 0x241   : > { %3741 = vmatmul.mubr.msk.bf16.vlgmr.msra.gmra.mrb[32].mxu1 %vm5613_vm8, %v6303_v26  ;;  %v3749_v26 = vpack.c.bf16 %v1904_v5, %v1900_v17  ;;  %v1985_v56 = vadd.s32 4294967294, %v6307_v55  ;;  %v1908_v3 = vsel %vm1882_vm5, %v1903_v59, %v1907_v50  ;;  %v1909_v59 = vrot.slane %v5399_v39, 6  ;;  %v4553_v39 = vld [vmem:[%s6210_s2 + $0x128] sm:$0xff]  }
 0x242   : > { %3744 = vmatprep.mubr.msk.bf16.mxu1 %vm5684_vm10, %v3743_v29  ;;  %4012 = vmatpush3.bf16.msra.mxu1 %v4543_v1  ;;  %v4547_v29 = vld [vmem:[%s6210_s2 + $0x110] sm:$0xff]   ;;  %v1911_v1 = vrot.slane %v5379_v33, 6  ;;  %v1902_v33 = vsel %vm1882_vm5, %v1897_v19, %v1901_v57  ;;  %v1987_v31 = vadd.s32 4294967294, %v6310_v9  ;;  %v1919_v17 = vrot.slane %v5413_v58, 6 }
 0x243   : > { %4013 = vmatprep.subr.bf16.mxu1 %v4544_v62  ;;  %vm2001_vm13 = vcmp.ge.s32.totalorder %v1985_v56, 0  ;;  %v4551_v62 = vld [vmem:[%s6210_s2 + $0x120] sm:$0xff]   ;;  %v3752_v11 = vpack.c.bf16 %v1902_v33, %v1898_v34  ;;  %v1915_v5 = vrot.slane %v5416_v43, 6  ;;  %v1917_v19 = vrot.slane %v5440_v15, 6  ;;  %v4557_v15 = vld [vmem:[%s6210_s2 + $0x138] sm:$0xff]  }
 0x244   : > { %v1912_v7 = vsel %vm1882_vm5, %v1907_v50, %v1911_v1  ;;  %vm5759_vm14 = vmpackc.low %vm4568_vm7, %vm2001_vm13  ;;  %vm2003_vm15 = vcmp.ge.s32.totalorder %v1987_v31, 0  ;;  %v6313_v56 = vld [vmem:[#allocation10_spill] sm:$0xff]  ;;  %v1923_v34 = vrot.slane %v5453_v45, 6 }
 0x245   : > { %v3755_v51 = vpack.c.bf16 %v1912_v7, %v1908_v3  ;;  %v1916_v43 = vsel %vm1882_vm5, %v1911_v1, %v1915_v5  ;;  %vm5790_vm2 = vmpackc.low %vm4568_vm7, %vm2003_vm15  ;;  %v6314_v1 = vand.u32 15, %v6313_v56  ;;  %v6328_v56 = vld [vmem:[#allocation24_spill] sm:$0xff] }
 0x246   : > { %4014 = vmatpush3.bf16.msra.mxu1 %v4545_v8  ;;  %v1924_v3 = vsel %vm1882_vm5, %v1919_v17, %v1923_v34 }
 0x247   : > { %4015 = vmatprep.subr.bf16.mxu1 %v4546_v20  ;;  %v1905_v20 = vrot.slane %v5402_v2, 6  ;;  %v1989_v50 = vadd.s32 4294967294, %v6314_v1  ;;  %v1943_v1 = vrot.slane %v6328_v56, 6 }
 0x249   : > { %3747 = vmatmul.mubr.msk.bf16.gmra.mrb[36].mxu1 %vm5684_vm10, %v3746_v40  ;;  %v1906_v2 = vsel %vm1882_vm5, %v1901_v57, %v1905_v20  ;;  %v1910_v58 = vsel %vm1882_vm5, %v1905_v20, %v1909_v59  ;;  %v4555_v40 = vld [vmem:[%s6210_s2 + $0x130] sm:$0xff]   ;;  %v4556_v57 = vld [vmem:[%s6210_s2 + $0x178] sm:$0xff]   ;;  %vm2005_vm3 = vcmp.ge.s32.totalorder %v1989_v50, 0  ;;  %v1939_v50 = vrot.slane %v5522_v27, 6 }
 0x24a   : > { %3750 = vmatprep.mubr.msk.bf16.mxu1 %vm5728_vm12, %v3749_v26  ;;  %4016 = vmatpush3.bf16.msra.mxu1 %v4547_v29  ;;  %v1920_v29 = vsel %vm1882_vm5, %v1915_v5, %v1919_v17  ;;  %v3758_v41 = vpack.c.bf16 %v1910_v58, %v1906_v2  ;;  %v1913_v26 = vrot.slane %v5443_v10, 6  ;;  %vm5815_vm4 = vmpackc.low %vm4568_vm7, %vm2005_vm3  ;;  %v6322_v5 = vld [vmem:[#allocation22_spill] sm:$0xff]  ;;  %v1931_v17 = vrot.slane %v5504_v60, 6  ;;  %v6325_v60 = vld [vmem:[#allocation23_spill] sm:$0xff] }
 0x24b   : > { %4017 = vmatprep.subr.bf16.mxu1 %v4548_v21  ;;  %v3761_v55 = vpack.c.bf16 %v1920_v29, %v1916_v43  ;;  %v1929_v21 = vrot.slane %v5516_v28, 6  ;;  %v1941_v27 = vrot.slane %v5553_v36, 6 }
 0x24c   : > { %v1914_v10 = vsel %vm1882_vm5, %v1909_v59, %v1913_v26  ;;  %v1918_v33 = vsel %vm1882_vm5, %v1913_v26, %v1917_v19  ;;  %v6320_v59 = vld [vmem:[#allocation11_spill] sm:$0xff]  ;;  %v6326_v26 = vld [vmem:[#allocation12_spill] sm:$0xff] }
 0x24d   : > { %v3764_v7 = vpack.c.bf16 %v1918_v33, %v1914_v10  ;;  %v6321_v9 = vand.u32 15, %v6320_v59  ;;  %v1937_v10 = vrot.slane %v5548_v54, 6  ;;  %v6333_v54 = vld [vmem:[#allocation16_spill] sm:$0xff] }
 0x24e   : > { %4018 = vmatpush3.bf16.msra.mxu1 %v4549_v49  ;;  %v6315_v49 = vld [vmem:[#allocation18_spill] sm:$0xff] }
 0x24f   : > { %4019 = vmatprep.subr.bf16.mxu1 %v4550_v48  ;;  %v1927_v48 = vrot.slane %v6315_v49, 6  ;;  %v1991_v31 = vadd.s32 4294967294, %v6321_v9  ;;  %v6336_v9 = vld [vmem:[#allocation4_spill] sm:$0xff] }
 0x251   : > { %3753 = vmatmul.mubr.msk.bf16.gmra.mrb[40].mxu1 %vm5728_vm12, %v3752_v11  ;;  %v1928_v45 = vsel %vm1882_vm5, %v1923_v34, %v1927_v48  ;;  %v6318_v11 = vld [vmem:[#allocation20_spill] sm:$0xff]  ;;  %vm2007_vm6 = vcmp.ge.s32.totalorder %v1991_v31, 0  ;;  %v1932_v58 = vsel %vm1882_vm5, %v1927_v48, %v1931_v17  ;;  %v1944_v34 = vsel %vm1882_vm5, %v1939_v50, %v1943_v1 }
 0x252   : > { %3756 = vmatprep.mubr.msk.bf16.mxu1 %vm5759_vm14, %v3755_v51  ;;  %4020 = vmatpush3.bf16.msra.mxu1 %v4551_v62  ;;  %v1925_v8 = vrot.slane %v6318_v11, 6  ;;  %v3767_v51 = vpack.c.bf16 %v1928_v45, %v1924_v3  ;;  %vm5834_vm8 = vmpackc.low %vm4568_vm7, %vm2007_vm6  ;;  %v6329_v3 = vld [vmem:[#allocation2_spill] sm:$0xff]  ;;  %v1942_v11 = vsel %vm1882_vm5, %v1937_v10, %v1941_v27  ;;  %v6337_v31 = vand.u32 15, %v6336_v9 }
 0x253   : > { %4021 = vmatprep.subr.bf16.mxu1 %v4552_v52  ;;  %v6319_v52 = vld [vmem:[#allocation21_spill] sm:$0xff]  ;;  %v6330_v45 = vand.u32 15, %v6329_v3  ;;  %v6352_v1 = vpack.c.bf16 %v5589_v44, %v5586_v16  ;;  %v6365_v27 = vpack.c.bf16 %v5641_v47, %v5638_v30 }
 0x254   : > { %v1921_v20 = vrot.slane %v6319_v52, 6  ;;  %v1930_v49 = vsel %vm1882_vm5, %v1925_v8, %v1929_v21  ;;  %v6331_v52 = vld [vmem:[#allocation3_spill] sm:$0xff] }
 0x255   : > { %v6332_v36 = vand.u32 15, %v6331_v52 }
 0x256   : > { %4022 = vmatpush3.bf16.msra.mxu1 %v4553_v39  ;;  %v1935_v39 = vrot.slane %v6322_v5, 6  ;;  %v1926_v2 = vsel %vm1882_vm5, %v1921_v20, %v1925_v8  ;;  %v2692_v5 = vadd.s32 2, %v6337_v31 }
 0x257   : > { %4023 = vmatprep.subr.bf16.mxu1 %v4554_v12  ;;  %v1922_v12 = vsel %vm1882_vm5, %v1917_v19, %v1921_v20  ;;  %v6327_v19 = vand.u32 15, %v6326_v26  ;;  %v2690_v20 = vadd.s32 2, %v6332_v36 }
 0x258   : > { %v1936_v43 = vsel %vm1882_vm5, %v1931_v17, %v1935_v39  ;;  %v3770_v29 = vpack.c.bf16 %v1926_v2, %v1922_v12  ;;  %v1940_v28 = vsel %vm1882_vm5, %v1935_v39, %v1939_v50  ;;  %v6338_v39 = vld [vmem:[#allocation15_spill] sm:$0xff]  ;;  %v6339_v17 = vld [vmem:[#allocation14_spill] sm:$0xff] }
 0x259   : > { %3759 = vmatmul.mubr.msk.bf16.gmra.mrb[44].mxu1 %vm5759_vm14, %v3758_v41  ;;  %v1933_v41 = vrot.slane %v6325_v60, 6  ;;  %v3779_v33 = vpack.c.bf16 %v1944_v34, %v1940_v28  ;;  %vm2722_vm13 = vcmp.lt.s32.totalorder %v2690_v20, 16  ;;  %v6340_v12 = vpack.c.bf16 %v6338_v39, %v6339_v17  ;;  %v6341_v2 = vld [vmem:[#allocation19_spill] sm:$0xff]  ;;  %v6356_v50 = vld [vmem:[#allocation26_spill] sm:$0xff] }
 0x25a   : > { %3762 = vmatprep.mubr.msk.bf16.mxu1 %vm5790_vm2, %v3761_v55  ;;  %4024 = vmatpush3.bf16.msra.mxu1 %v4555_v40  ;;  %v1993_v55 = vadd.s32 4294967294, %v6327_v19  ;;  %vm3838_vm14 = vmpackc.low %vm2722_vm13, %vm4568_vm7  ;;  %v6361_v28 = vpack.c.bf16 %v5623_v0, %v5620_v14  ;;  %v6362_v34 = vpack.c.bf16 %v5633_v24, %v5626_v46  ;;  %v6367_v0 = vpack.c.bf16 %v5662_v35, %v5659_v42  ;;  %v6368_v24 = vld [vmem:[#allocation28_spill] sm:$0xff] }
 0x25b   : > { %4025 = vmatprep.subr.bf16.mxu1 %v4556_v57  ;;  %v3773_v57 = vpack.c.bf16 %v1936_v43, %v1932_v58  ;;  %v1934_v48 = vsel %vm1882_vm5, %v1929_v21, %v1933_v41  ;;  %v1938_v62 = vsel %vm1882_vm5, %v1933_v41, %v1937_v10  ;;  %v6342_v58 = vld [vmem:[#allocation17_spill] sm:$0xff]  ;;  %vm2724_vm5 = vcmp.lt.s32.totalorder %v2692_v5, 16 }
 0x25c   : > { %vm2009_vm9 = vcmp.ge.s32.totalorder %v1993_v55, 0  ;;  %v3782_v8 = vpack.c.bf16 %v1942_v11, %v1938_v62  ;;  %v6343_v43 = vpack.c.bf16 %v6341_v2, %v6342_v58  ;;  %vm3844_vm15 = vmpackc.low %vm2724_vm5, %vm4568_vm7  ;;  %v6346_v41 = vpack.c.bf16 %v5562_v32, %v5558_v22  ;;  %v6350_v55 = vld [vmem:[#allocation25_spill] sm:$0xff]  ;;  %v6353_v22 = vld [vmem:[#allocation7_spill] sm:$0xff] }
 0x25d   : > { %vm3778_vm10 = vmpackc.low %vm4568_vm7, %vm2009_vm9  ;;  %v6347_v21 = vpack.c.bf16 %v5570_v25, %v5567_v4  ;;  %v6351_v56 = vpack.c.bf16 %v5580_v38, %v6350_v55  ;;  %v6354_v32 = vand.u32 15, %v6353_v22  ;;  %v6355_v25 = vld [vmem:[#allocation27_spill] sm:$0xff]  ;;  %v6359_v38 = vld [vmem:[#allocation8_spill] sm:$0xff]  ;;  %v6366_v10 = vpack.c.bf16 %v5654_v18, %v5644_v61 }
 0x25e   : > { %4026 = vmatpush3.bf16.msra.mxu1 %v4557_v15  ;;  %v3776_v15 = vpack.c.bf16 %v1934_v48, %v1930_v49  ;;  %v6357_v49 = vpack.c.bf16 %v6355_v25, %v6356_v50  ;;  %v6358_v48 = vpack.c.bf16 %v5608_v63, %v5600_v37  ;;  %v6360_v44 = vand.u32 15, %v6359_v38 }
 0x25f   : > { %v2698_v4 = vadd.s32 2, %v6354_v32  ;;  %v6369_v14 = vpack.c.bf16 %v5671_v13, %v6368_v24  ;;  %v3289_v24 = vld [vmem:[%s6214_s6 + $0x8] sm:$0xff] }
 0x260   : > { %v2700_v16 = vadd.s32 2, %v6360_v44 }
 0x261   : > { %3765 = vmatmul.mubr.msk.bf16.gmra.mrb[48].mxu1 %vm5790_vm2, %v3764_v7  ;;  %v2688_v7 = vadd.s32 2, %v6330_v45 }
 0x262   : > { %3768 = vmatprep.mubr.msk.bf16.mxu1 %vm5815_vm4, %v3767_v51  ;;  %v6334_v51 = vld [vmem:[#allocation13_spill] sm:$0xff] }
 0x263   : > { %vm2720_vm11 = vcmp.lt.s32.totalorder %v2688_v7, 16  ;;  %v6335_v59 = vpack.c.bf16 %v6333_v54, %v6334_v51 }
 0x264   : > { %vm3832_vm12 = vmpackc.low %vm2720_vm11, %vm4568_vm7 }
 0x269   : > { %3771 = vmatmul.mubr.msk.bf16.gmra.mrb[52].mxu1 %vm5815_vm4, %v3770_v29  ;;  %v6344_v29 = vld [vmem:[#allocation5_spill] sm:$0xff] }
 0x26a   : > { %3774 = vmatprep.mubr.msk.bf16.mxu1 %vm5834_vm8, %v3773_v57  ;;  %v6345_v40 = vand.u32 15, %v6344_v29  ;;  %v6348_v57 = vld [vmem:[#allocation6_spill] sm:$0xff] }
 0x26b   : > { %v6349_v26 = vand.u32 15, %v6348_v57 }
 0x26c   : > { %v2694_v60 = vadd.s32 2, %v6345_v40 }
 0x26d   : > { %v2696_v19 = vadd.s32 2, %v6349_v26 }
 0x26e   : > { %vm2726_vm2 = vcmp.lt.s32.totalorder %v2694_v60, 16 }
 0x26f   : > { %vm3850_vm3 = vmpackc.low %vm2726_vm2, %vm4568_vm7  ;;  %vm2728_vm4 = vcmp.lt.s32.totalorder %v2696_v19, 16 }
 0x270   : > { %vm3856_vm6 = vmpackc.low %vm2728_vm4, %vm4568_vm7 }
 0x271   : > { %3777 = vmatmul.mubr.msk.bf16.gmra.mrb[56].mxu1 %vm5834_vm8, %v3776_v15  ;;  %vm2730_vm8 = vcmp.lt.s32.totalorder %v2698_v4, 16  ;;  %v6363_v15 = vld [vmem:[#allocation9_spill] sm:$0xff] }
 0x272   : > { %3780 = vmatprep.mubr.msk.bf16.mxu1 %vm3778_vm10, %v3779_v33  ;;  %vm3862_vm9 = vmpackc.low %vm2730_vm8, %vm4568_vm7  ;;  %v6364_v37 = vand.u32 15, %v6363_v15 }
 0x274   : > { %v2702_v63 = vadd.s32 2, %v6364_v37 }
 0x279   : > { %3783 = vmatmul.mubr.msk.bf16.gmra.mrb[60].mxu1 %vm3778_vm10, %v3782_v8  ;;  %vm2732_vm10 = vcmp.lt.s32.totalorder %v2700_v16, 16 }
 0x27a   : > { %3834 = vmatprep.mubr.msk.bf16.mxu1 %vm3832_vm12, %v6335_v59  ;;  %vm3868_vm11 = vmpackc.low %vm2732_vm10, %vm4568_vm7 }
 0x281   : > { %3837 = vmatmul.mubr.msk.bf16.vlgmr.msra.gmra.mrb[64].mxu1 %vm3832_vm12, %v6340_v12  ;;  %vm2734_vm12 = vcmp.lt.s32.totalorder %v2702_v63, 16 }
 0x282   : > { %3840 = vmatprep.mubr.msk.bf16.mxu1 %vm3838_vm14, %v6343_v43  ;;  %vm3874_vm13 = vmpackc.low %vm2734_vm12, %vm4568_vm7  ;;  %vm3554_vm7 = vcmask 785408  }
 0x289   : > { %3843 = vmatmul.mubr.msk.bf16.gmra.mrb[68].mxu1 %vm3838_vm14, %v6346_v41 }
 0x28a   : > { %3846 = vmatprep.mubr.msk.bf16.mxu1 %vm3844_vm15, %v6347_v21 }
 0x291   : > { %3849 = vmatmul.mubr.msk.bf16.gmra.mrb[72].mxu1 %vm3844_vm15, %v6351_v56 }
 0x292   : > { %3852 = vmatprep.mubr.msk.bf16.mxu1 %vm3850_vm3, %v6352_v1 }
 0x299   : > { %3855 = vmatmul.mubr.msk.bf16.gmra.mrb[76].mxu1 %vm3850_vm3, %v6357_v49 }
 0x29a   : > { %3858 = vmatprep.mubr.msk.bf16.mxu1 %vm3856_vm6, %v6358_v48 }
 0x2a1   : > { %3861 = vmatmul.mubr.msk.bf16.gmra.mrb[80].mxu1 %vm3856_vm6, %v6361_v28 }
 0x2a2   : > { %3864 = vmatprep.mubr.msk.bf16.mxu1 %vm3862_vm9, %v6362_v34 }
 0x2a9   : > { %3867 = vmatmul.mubr.msk.bf16.gmra.mrb[84].mxu1 %vm3862_vm9, %v6365_v27 }
 0x2aa   : > { %3870 = vmatprep.mubr.msk.bf16.mxu1 %vm3868_vm11, %v6366_v10 }
 0x2b1   : > { %3873 = vmatmul.mubr.msk.bf16.gmra.mrb[88].mxu1 %vm3868_vm11, %v6367_v0  ;;  %v3288_v0 = vld [vmem:[%s6214_s6] sm:$0xff] }
 0x2b2   : > { %3876 = vmatprep.mubr.msk.bf16.mxu1 %vm3874_vm13, %v6369_v14  ;;  %v3290_v14 = vld [vmem:[%s6214_s6 + $0x10] sm:$0xff] }
 0x2b9   : > { %3879 = vmatmul.mubr.msk.bf16.gmra.mrb[92].mxu1 %vm3874_vm13, %v3878_v6 }
 0x2d4   : > { %v3899_v46 = vpop.f32.mrb[0].mxu1 }
 0x2d5   : > { %v3900_v30 = vpop.f32.mrb[1].mxu1 }
 0x2d6   : > { %v3901_v47 = vadd.f32 %v3900_v30, %v3899_v46  ;;  %v3902_v61 = vpop.f32.mrb[2].mxu1 }
 0x2d7   : > { %v3903_v18 = vpop.f32.mrb[3].mxu1 }
 0x2d8   : > { %v3904_v33 = vadd.f32 %v3903_v18, %v3902_v61  ;;  %v3291_v61 = vld [vmem:[%s6214_s6 + $0x18] sm:$0xff] }
 0x2d9   : > { %v4225_v18 = vpack.c.bf16 %v3291_v61, %v3290_v14 }
 0x2dc   : > { %v3905_v3 = vpop.f32.mrb[4].mxu1 }
 0x2dd   : > { %v3906_v45 = vpop.f32.mrb[5].mxu1 }
 0x2de   : > { %v3907_v7 = vadd.f32 %v3906_v45, %v3905_v3  ;;  %v3908_v62 = vpop.f32.mrb[6].mxu1  ;;  %v3293_v3 = vld [vmem:[%s6214_s6 + $0x28] sm:$0xff] }
 0x2df   : > { %v3909_v42 = vpop.f32.mrb[7].mxu1 }
 0x2e0   : > { %v3910_v35 = vadd.f32 %v3909_v42, %v3908_v62 }
 0x2e4   : > { %v3911_v11 = vpop.f32.mrb[8].mxu1 }
 0x2e5   : > { %v3912_v8 = vpop.f32.mrb[9].mxu1 }
 0x2e6   : > { %v5931_v13 = vadd.f32 %v3912_v8, %v3911_v11  ;;  %v3914_v52 = vpop.f32.mrb[10].mxu1  ;;  %v3294_v11 = vld [vmem:[%s6214_s6 + $0x30] sm:$0xff]  ;;  %v3295_v8 = vld [vmem:[%s6214_s6 + $0x38] sm:$0xff] }
 0x2e7   : > { %v3915_v36 = vpop.f32.mrb[11].mxu1 }
 0x2e8   : > { %v5933_v23 = vadd.f32 %v3915_v36, %v3914_v52 }
 0x2ec   : > { %v3917_v6 = vpop.f32.mrb[12].mxu1 }
 0x2ed   : > { %v3918_v53 = vpop.f32.mrb[13].mxu1 }
 0x2ee   : > { %v5935_v20 = vadd.f32 %v3918_v53, %v3917_v6  ;;  %v3920_v54 = vpop.f32.mrb[14].mxu1 }
 0x2ef   : > { %v3921_v51 = vpop.f32.mrb[15].mxu1 }
 0x2f0   : > { %v5937_v59 = vadd.f32 %v3921_v51, %v3920_v54  ;;  %v4233_v54 = vpack.c.bf16 %v3295_v8, %v3294_v11  ;;  %v3296_v51 = vld [vmem:[%s6214_s6 + $0x40] sm:$0xff] }
 0x2f4   : > { %v3923_v9 = vpop.f32.mrb[16].mxu1 }
 0x2f5   : > { %v3924_v31 = vpop.f32.mrb[17].mxu1 }
 0x2f6   : > { %v5939_v5 = vadd.f32 %v3924_v31, %v3923_v9  ;;  %v3926_v39 = vpop.f32.mrb[18].mxu1  ;;  %v3297_v9 = vld [vmem:[%s6214_s6 + $0x48] sm:$0xff] }
 0x2f7   : > { %v3927_v17 = vpop.f32.mrb[19].mxu1 }
 0x2f8   : > { %v5941_v12 = vadd.f32 %v3927_v17, %v3926_v39  ;;  %v4237_v17 = vpack.c.bf16 %v3297_v9, %v3296_v51 }
 0x2fc   : > { %v3929_v2 = vpop.f32.mrb[20].mxu1 }
 0x2fd   : > { %v3930_v58 = vpop.f32.mrb[21].mxu1 }
 0x2fe   : > { %v5943_v43 = vadd.f32 %v3930_v58, %v3929_v2  ;;  %v3932_v29 = vpop.f32.mrb[22].mxu1  ;;  %v3298_v2 = vld [vmem:[%s6214_s6 + $0x50] sm:$0xff]  ;;  %v3299_v58 = vld [vmem:[%s6214_s6 + $0x58] sm:$0xff] }
 0x2ff   : > { %v3933_v40 = vpop.f32.mrb[23].mxu1 }
 0x300   : > { %v5945_v60 = vadd.f32 %v3933_v40, %v3932_v29 }
 0x304   : > { %v3935_v41 = vpop.f32.mrb[24].mxu1 }
 0x305   : > { %v3936_v21 = vpop.f32.mrb[25].mxu1 }
 0x306   : > { %v5947_v57 = vadd.f32 %v3936_v21, %v3935_v41  ;;  %v3938_v26 = vpop.f32.mrb[26].mxu1 }
 0x307   : > { %v3939_v19 = vpop.f32.mrb[27].mxu1 }
 0x308   : > { %v5949_v55 = vadd.f32 %v3939_v19, %v3938_v26  ;;  %v4241_v26 = vpack.c.bf16 %v3299_v58, %v3298_v2  ;;  %v3300_v19 = vld [vmem:[%s6214_s6 + $0x60] sm:$0xff] }
 0x30c   : > { %v3941_v56 = vpop.f32.mrb[28].mxu1 }
 0x30d   : > { %v3942_v1 = vpop.f32.mrb[29].mxu1 }
 0x30e   : > { %v5951_v22 = vadd.f32 %v3942_v1, %v3941_v56  ;;  %v3944_v32 = vpop.f32.mrb[30].mxu1  ;;  %v3301_v56 = vld [vmem:[%s6214_s6 + $0x68] sm:$0xff] }
 0x30f   : > { %v3945_v4 = vpop.f32.mrb[31].mxu1 }
 0x310   : > { %v5953_v25 = vadd.f32 %v3945_v4, %v3944_v32  ;;  %v4245_v4 = vpack.c.bf16 %v3301_v56, %v3300_v19 }
 0x314   : > { %v3963_v50 = vpop.f32.mrb[32].mxu1 }
 0x315   : > { %v3964_v49 = vpop.f32.mrb[33].mxu1 }
 0x316   : > { %v3965_v48 = vadd.f32 %v3964_v49, %v3963_v50  ;;  %v3966_v38 = vpop.f32.mrb[34].mxu1 }
 0x317   : > { %v3967_v44 = vpop.f32.mrb[35].mxu1 }
 0x318   : > { %v5955_v16 = vadd.f32 %v3965_v48, %v3901_v47  ;;  %v3968_v28 = vadd.f32 %v3967_v44, %v3966_v38  ;;  %v4221_v47 = vpack.c.bf16 %v3289_v24, %v3288_v0 }
 0x31a   : > { %v5957_v34 = vadd.f32 %v3968_v28, %v3904_v33  ;;  %v3292_v33 = vld [vmem:[%s6214_s6 + $0x20] sm:$0xff]  ;;  %4222 = vmatprep.subr.bf16.mxu0 %v4221_v47 }
 0x31b   : > { %4224 = vmatpush3.bf16.msra.mxu0 %v4221_v47  ;;  %v4229_v62 = vpack.c.bf16 %v3293_v3, %v3292_v33 }
 0x31c   : > { %v3969_v15 = vpop.f32.mrb[36].mxu1  ;;  %4226 = vmatprep.subr.bf16.mxu0 %v4225_v18 }
 0x31d   : > { %v3970_v37 = vpop.f32.mrb[37].mxu1 }
 0x31e   : > { %v3971_v63 = vadd.f32 %v3970_v37, %v3969_v15  ;;  %v3972_v27 = vpop.f32.mrb[38].mxu1 }
 0x31f   : > { %v3973_v10 = vpop.f32.mrb[39].mxu1  ;;  %4228 = vmatpush3.bf16.msra.mxu0 %v4225_v18 }
 0x320   : > { %v5968_v46 = vadd.f32 %v3971_v63, %v3907_v7  ;;  %v3974_v30 = vadd.f32 %v3973_v10, %v3972_v27  ;;  %4230 = vmatprep.subr.bf16.mxu0 %v4229_v62 }
 0x322   : > { %v5979_v45 = vadd.f32 %v3974_v30, %v3910_v35 }
 0x323   : > { %4232 = vmatpush3.bf16.msra.mxu0 %v4229_v62 }
 0x324   : > { %v3975_v7 = vpop.f32.mrb[40].mxu1  ;;  %4234 = vmatprep.subr.bf16.mxu0 %v4233_v54 }
 0x325   : > { %v3976_v42 = vpop.f32.mrb[41].mxu1 }
 0x326   : > { %v3977_v52 = vadd.f32 %v3976_v42, %v3975_v7  ;;  %v3978_v36 = vpop.f32.mrb[42].mxu1 }
 0x327   : > { %v3979_v6 = vpop.f32.mrb[43].mxu1  ;;  %4236 = vmatpush3.bf16.msra.mxu0 %v4233_v54 }
 0x328   : > { %v5988_v35 = vadd.f32 %v3977_v52, %v5931_v13  ;;  %v3980_v53 = vadd.f32 %v3979_v6, %v3978_v36  ;;  %4238 = vmatprep.subr.bf16.mxu0 %v4237_v17 }
 0x32a   : > { %v5997_v31 = vadd.f32 %v3980_v53, %v5933_v23 }
 0x32b   : > { %4240 = vmatpush3.bf16.msra.mxu0 %v4237_v17 }
 0x32c   : > { %v3981_v39 = vpop.f32.mrb[44].mxu1  ;;  %4242 = vmatprep.subr.bf16.mxu0 %v4241_v26 }
 0x32d   : > { %v3982_v13 = vpop.f32.mrb[45].mxu1 }
 0x32e   : > { %v3983_v29 = vadd.f32 %v3982_v13, %v3981_v39  ;;  %v3984_v40 = vpop.f32.mrb[46].mxu1 }
 0x32f   : > { %v3985_v41 = vpop.f32.mrb[47].mxu1  ;;  %4244 = vmatpush3.bf16.msra.mxu0 %v4241_v26 }
 0x330   : > { %v6006_v23 = vadd.f32 %v3983_v29, %v5935_v20  ;;  %v3986_v21 = vadd.f32 %v3985_v41, %v3984_v40  ;;  %4246 = vmatprep.subr.bf16.mxu0 %v4245_v4 }
 0x332   : > { %v6015_v1 = vadd.f32 %v3986_v21, %v5937_v59 }
 0x333   : > { %4248 = vmatpush3.bf16.msra.mxu0 %v4245_v4  ;;  %v3302_v4 = vld [vmem:[%s6214_s6 + $0x70] sm:$0xff] }
 0x334   : > { %v3987_v32 = vpop.f32.mrb[48].mxu1 }
 0x335   : > { %v3988_v20 = vpop.f32.mrb[49].mxu1 }
 0x336   : > { %v3989_v50 = vadd.f32 %v3988_v20, %v3987_v32  ;;  %v3990_v49 = vpop.f32.mrb[50].mxu1  ;;  %v3303_v20 = vld [vmem:[%s6214_s6 + $0x78] sm:$0xff] }
 0x337   : > { %v3991_v48 = vpop.f32.mrb[51].mxu1 }
 0x338   : > { %v6018_v38 = vadd.f32 %v3989_v50, %v5939_v5  ;;  %v3992_v44 = vadd.f32 %v3991_v48, %v3990_v49  ;;  %v4249_v48 = vpack.c.bf16 %v3303_v20, %v3302_v4 }
 0x33a   : > { %v6021_v28 = vadd.f32 %v3992_v44, %v5941_v12  ;;  %4250 = vmatprep.subr.bf16.mxu0 %v4249_v48 }
 0x33b   : > { %4252 = vmatpush3.bf16.msra.mxu0 %v4249_v48 }
 0x33c   : > { %v3993_v59 = vpop.f32.mrb[52].mxu1 }
 0x33d   : > { %v3994_v15 = vpop.f32.mrb[53].mxu1 }
 0x33e   : > { %v3995_v37 = vadd.f32 %v3994_v15, %v3993_v59  ;;  %v3996_v63 = vpop.f32.mrb[54].mxu1 }
 0x33f   : > { %v3997_v27 = vpop.f32.mrb[55].mxu1 }
 0x340   : > { %v6024_v10 = vadd.f32 %v3995_v37, %v5943_v43  ;;  %v3998_v0 = vadd.f32 %v3997_v27, %v3996_v63 }
 0x342   : > { %v6027_v24 = vadd.f32 %v3998_v0, %v5945_v60 }
 0x344   : > { %v3999_v5 = vpop.f32.mrb[56].mxu1 }
 0x345   : > { %v4000_v14 = vpop.f32.mrb[57].mxu1 }
 0x346   : > { %v4001_v30 = vadd.f32 %v4000_v14, %v3999_v5  ;;  %v4002_v47 = vpop.f32.mrb[58].mxu1 }
 0x347   : > { %v4003_v61 = vpop.f32.mrb[59].mxu1 }
 0x348   : > { %v6030_v12 = vadd.f32 %v4001_v30, %v5947_v57  ;;  %v4004_v18 = vadd.f32 %v4003_v61, %v4002_v47 }
 0x34a   : > { %v6033_v33 = vadd.f32 %v4004_v18, %v5949_v55  ;;  %v6044_v55 = vld [vmem:[%s6212_s4] ss:$0 sm:$0xff] }
 0x34c   : > { %v4005_v3 = vpop.f32.mrb[60].mxu1 }
 0x34d   : > { %v4006_v7 = vpop.f32.mrb[61].mxu1 }
 0x34e   : > { %v4007_v43 = vadd.f32 %v4006_v7, %v4005_v3  ;;  %v4008_v62 = vpop.f32.mrb[62].mxu1 }
 0x34f   : > { %v4009_v42 = vpop.f32.mrb[63].mxu1 }
 0x350   : > { %v6036_v60 = vadd.f32 %v4007_v43, %v5951_v22  ;;  %v4010_v11 = vadd.f32 %v4009_v42, %v4008_v62 }
 0x352   : > { %v6039_v8 = vadd.f32 %v4010_v11, %v5953_v25 }
 0x354   : > { %v4027_v52 = vpop.f32.mrb[64].mxu1 }
 0x355   : > { %v4028_v36 = vpop.f32.mrb[65].mxu1 }
 0x356   : > { %v4029_v57 = vadd.f32 %v4028_v36, %v4027_v52  ;;  %v4030_v6 = vpop.f32.mrb[66].mxu1 }
 0x357   : > { %v4031_v53 = vpop.f32.mrb[67].mxu1 }
 0x358   : > { %v3057_v54 = vadd.f32 %v4029_v57, %v5955_v16  ;;  %v4032_v51 = vadd.f32 %v4031_v53, %v4030_v6 }
 0x35a   : > { %v3080_v22 = vadd.f32 %v6044_v55, %v3057_v54  ;;  %v3058_v9 = vadd.f32 %v4032_v51, %v5957_v34 }
 0x35c   : > { %v3096_v39 = vmax.f32 %v3080_v22, 0.0  ;;  %v3081_v25 = vadd.f32 %v6044_v55, %v3058_v9  ;;  %v4033_v17 = vpop.f32.mrb[68].mxu1 }
 0x35d   : > { %v4034_v13 = vpop.f32.mrb[69].mxu1 }
 0x35e   : > { %v3097_v2 = vmax.f32 %v3081_v25, 0.0  ;;  %v4035_v58 = vadd.f32 %v4034_v13, %v4033_v17  ;;  %v4036_v29 = vpop.f32.mrb[70].mxu1  ;;  %v3128_v41 = vrot.slane %v3096_v39, 2 }
 0x35f   : > { %v4037_v40 = vpop.f32.mrb[71].mxu1 }
 0x360   : > { %v3129_v21 = vrot.slane %v3097_v2, 2  ;;  %v3059_v26 = vadd.f32 %v4035_v58, %v5968_v46  ;;  %v4038_v19 = vadd.f32 %v4037_v40, %v4036_v29 }
 0x362   : > { %v3082_v16 = vadd.f32 %v6044_v55, %v3059_v26  ;;  %v3060_v56 = vadd.f32 %v4038_v19, %v5979_v45  ;;  %v3130_v34 = vsel %vm2590_vm0, %v3128_v41, %v3129_v21 }
 0x363   : > { %v6054_v32 = vmax.f32 %v3096_v39, %v3130_v34 }
 0x364   : > { %v3098_v50 = vmax.f32 %v3082_v16, 0.0  ;;  %v3083_v46 = vadd.f32 %v6044_v55, %v3060_v56  ;;  %v4039_v49 = vpop.f32.mrb[72].mxu1 }
 0x365   : > { %v4040_v44 = vpop.f32.mrb[73].mxu1 }
 0x366   : > { %v3131_v59 = vrot.slane %v3098_v50, 2  ;;  %v3099_v45 = vmax.f32 %v3083_v46, 0.0  ;;  %v4041_v15 = vadd.f32 %v4040_v44, %v4039_v49  ;;  %v4042_v37 = vpop.f32.mrb[74].mxu1 }
 0x367   : > { %v4043_v63 = vpop.f32.mrb[75].mxu1 }
 0x368   : > { %v3133_v27 = vrot.slane %v3099_v45, 2  ;;  %v3061_v0 = vadd.f32 %v4041_v15, %v5988_v35  ;;  %v4044_v5 = vadd.f32 %v4043_v63, %v4042_v37  ;;  %v3132_v14 = vsel %vm2590_vm0, %v3129_v21, %v3131_v59 }
 0x369   : > { %v6065_v30 = vmax.f32 %v3097_v2, %v3132_v14 }
 0x36a   : > { %v3084_v47 = vadd.f32 %v6044_v55, %v3061_v0  ;;  %v3062_v61 = vadd.f32 %v4044_v5, %v5997_v31  ;;  %v3134_v18 = vsel %vm2590_vm0, %v3131_v59, %v3133_v27 }
 0x36b   : > { %v4443_v3 = vpack.i.bf16 %v6065_v30, %v6054_v32  ;;  %v6072_v7 = vmax.f32 %v3098_v50, %v3134_v18 }
 0x36c   : > { %v3100_v43 = vmax.f32 %v3084_v47, 0.0  ;;  %v3085_v62 = vadd.f32 %v6044_v55, %v3062_v61  ;;  %v4045_v35 = vpop.f32.mrb[76].mxu1 }
 0x36d   : > { %v4046_v42 = vpop.f32.mrb[77].mxu1  ;;  %4444 = vrot.lane.b32.xlu0 %v4443_v3, %s4567_s15 }
 0x36e   : > { %v3135_v11 = vrot.slane %v3100_v43, 2  ;;  %v3101_v52 = vmax.f32 %v3085_v62, 0.0  ;;  %v4047_v36 = vadd.f32 %v4046_v42, %v4045_v35  ;;  %v4048_v57 = vpop.f32.mrb[78].mxu1 }
 0x36f   : > { %v4049_v6 = vpop.f32.mrb[79].mxu1 }
 0x370   : > { %v3137_v31 = vrot.slane %v3101_v52, 2  ;;  %v3063_v53 = vadd.f32 %v4047_v36, %v6006_v23  ;;  %v4050_v54 = vadd.f32 %v4049_v6, %v4048_v57  ;;  %v3136_v51 = vsel %vm2590_vm0, %v3133_v27, %v3135_v11 }
 0x371   : > { %v6078_v22 = vmax.f32 %v3099_v45, %v3136_v51 }
 0x372   : > { %v3086_v9 = vadd.f32 %v6044_v55, %v3063_v53  ;;  %v3064_v39 = vadd.f32 %v4050_v54, %v6015_v1  ;;  %v3138_v25 = vsel %vm2590_vm0, %v3135_v11, %v3137_v31 }
 0x373   : > { %v4448_v17 = vpack.i.bf16 %v6078_v22, %v6072_v7  ;;  %v6085_v13 = vmax.f32 %v3100_v43, %v3138_v25 }
 0x374   : > { %v3102_v2 = vmax.f32 %v3086_v9, 0.0  ;;  %v3087_v58 = vadd.f32 %v6044_v55, %v3064_v39  ;;  %v4051_v23 = vpop.f32.mrb[80].mxu1 }
 0x375   : > { %v4052_v29 = vpop.f32.mrb[81].mxu1  ;;  %4449 = vrot.lane.b32.xlu1 %v4448_v17, %s4567_s15 }
 0x376   : > { %v3139_v40 = vrot.slane %v3102_v2, 2  ;;  %v3103_v41 = vmax.f32 %v3087_v58, 0.0  ;;  %v4053_v21 = vadd.f32 %v4052_v29, %v4051_v23  ;;  %v4054_v26 = vpop.f32.mrb[82].mxu1 }
 0x377   : > { %v4055_v19 = vpop.f32.mrb[83].mxu1 }
 0x378   : > { %v3141_v1 = vrot.slane %v3103_v41, 2  ;;  %v3065_v16 = vadd.f32 %v4053_v21, %v6018_v38  ;;  %v4056_v56 = vadd.f32 %v4055_v19, %v4054_v26  ;;  %v3140_v34 = vsel %vm2590_vm0, %v3137_v31, %v3139_v40 }
 0x379   : > { %v6091_v4 = vmax.f32 %v3101_v52, %v3140_v34 }
 0x37a   : > { %v3088_v20 = vadd.f32 %v6044_v55, %v3065_v16  ;;  %v3066_v50 = vadd.f32 %v4056_v56, %v6021_v28  ;;  %v3142_v46 = vsel %vm2590_vm0, %v3139_v40, %v3141_v1 }
 0x37b   : > { %v4453_v49 = vpack.i.bf16 %v6091_v4, %v6085_v13  ;;  %v6098_v48 = vmax.f32 %v3102_v2, %v3142_v46 }
 0x37c   : > { %v3104_v44 = vmax.f32 %v3088_v20, 0.0  ;;  %v3089_v59 = vadd.f32 %v6044_v55, %v3066_v50  ;;  %v4057_v38 = vpop.f32.mrb[84].mxu1 }
 0x37d   : > { %v4058_v45 = vpop.f32.mrb[85].mxu1  ;;  %4454 = vrot.lane.b32.xlu0 %v4453_v49, %s4567_s15 }
 0x37e   : > { %v3143_v15 = vrot.slane %v3104_v44, 2  ;;  %v3105_v37 = vmax.f32 %v3089_v59, 0.0  ;;  %v4059_v63 = vadd.f32 %v4058_v45, %v4057_v38  ;;  %v4060_v27 = vpop.f32.mrb[86].mxu1 }
 0x37f   : > { %v4061_v0 = vpop.f32.mrb[87].mxu1 }
 0x380   : > { %v3145_v28 = vrot.slane %v3105_v37, 2  ;;  %v3067_v5 = vadd.f32 %v4059_v63, %v6024_v10  ;;  %v4062_v14 = vadd.f32 %v4061_v0, %v4060_v27  ;;  %v3144_v47 = vsel %vm2590_vm0, %v3141_v1, %v3143_v15 }
 0x381   : > { %v6104_v61 = vmax.f32 %v3103_v41, %v3144_v47 }
 0x382   : > { %v3090_v18 = vadd.f32 %v6044_v55, %v3067_v5  ;;  %v3068_v3 = vadd.f32 %v4062_v14, %v6027_v24  ;;  %v3146_v43 = vsel %vm2590_vm0, %v3143_v15, %v3145_v28 }
 0x383   : > { %v4458_v62 = vpack.i.bf16 %v6104_v61, %v6098_v48  ;;  %v6111_v35 = vmax.f32 %v3104_v44, %v3146_v43 }
 0x384   : > { %v3106_v42 = vmax.f32 %v3090_v18, 0.0  ;;  %v3091_v11 = vadd.f32 %v6044_v55, %v3068_v3  ;;  %v4063_v10 = vpop.f32.mrb[88].mxu1 }
 0x385   : > { %v4064_v52 = vpop.f32.mrb[89].mxu1  ;;  %4459 = vrot.lane.b32.xlu1 %v4458_v62, %s4567_s15 }
 0x386   : > { %v3147_v36 = vrot.slane %v3106_v42, 2  ;;  %v3107_v57 = vmax.f32 %v3091_v11, 0.0  ;;  %v4065_v6 = vadd.f32 %v4064_v52, %v4063_v10  ;;  %v4066_v31 = vpop.f32.mrb[90].mxu1 }
 0x387   : > { %v4067_v53 = vpop.f32.mrb[91].mxu1 }
 0x388   : > { %v3149_v24 = vrot.slane %v3107_v57, 2  ;;  %v3069_v54 = vadd.f32 %v4065_v6, %v6030_v12  ;;  %v4068_v51 = vadd.f32 %v4067_v53, %v4066_v31  ;;  %v3148_v9 = vsel %vm2590_vm0, %v3145_v28, %v3147_v36 }
 0x389   : > { %v6117_v39 = vmax.f32 %v3105_v37, %v3148_v9 }
 0x38a   : > { %v3092_v25 = vadd.f32 %v6044_v55, %v3069_v54  ;;  %v3070_v17 = vadd.f32 %v4068_v51, %v6033_v33  ;;  %v3150_v2 = vsel %vm2590_vm0, %v3147_v36, %v3149_v24 }
 0x38b   : > { %v4463_v58 = vpack.i.bf16 %v6117_v39, %v6111_v35  ;;  %v6124_v23 = vmax.f32 %v3106_v42, %v3150_v2 }
 0x38c   : > { %v3108_v29 = vmax.f32 %v3092_v25, 0.0  ;;  %v3093_v40 = vadd.f32 %v6044_v55, %v3070_v17  ;;  %v4069_v12 = vpop.f32.mrb[92].mxu1 }
 0x38d   : > { %v4070_v41 = vpop.f32.mrb[93].mxu1  ;;  %4464 = vrot.lane.b32.xlu0 %v4463_v58, %s4567_s15 }
 0x38e   : > { %v3151_v21 = vrot.slane %v3108_v29, 2  ;;  %v3109_v26 = vmax.f32 %v3093_v40, 0.0  ;;  %v4071_v19 = vadd.f32 %v4070_v41, %v4069_v12  ;;  %v4072_v1 = vpop.f32.mrb[94].mxu1 }
 0x38f   : > { %v4073_v16 = vpop.f32.mrb[95].mxu1 }
 0x390   : > { %v3153_v33 = vrot.slane %v3109_v26, 2  ;;  %v3071_v56 = vadd.f32 %v4071_v19, %v6036_v60  ;;  %v4074_v34 = vadd.f32 %v4073_v16, %v4072_v1  ;;  %v3152_v20 = vsel %vm2590_vm0, %v3149_v24, %v3151_v21 }
 0x391   : > { %v6130_v50 = vmax.f32 %v3107_v57, %v3152_v20 }
 0x392   : > { %v3094_v46 = vadd.f32 %v6044_v55, %v3071_v56  ;;  %v3072_v49 = vadd.f32 %v4074_v34, %v6039_v8  ;;  %v3154_v44 = vsel %vm2590_vm0, %v3151_v21, %v3153_v33 }
 0x393   : > { %v4468_v59 = vpack.i.bf16 %v6130_v50, %v6124_v23  ;;  %v6137_v38 = vmax.f32 %v3108_v29, %v3154_v44 }
 0x394   : > { %v3110_v45 = vmax.f32 %v3094_v46, 0.0  ;;  %v3095_v15 = vadd.f32 %v6044_v55, %v3072_v49 }
 0x395   : > { %4469 = vrot.lane.b32.xlu1 %v4468_v59, %s4567_s15 }
 0x396   : > { %v3155_v60 = vrot.slane %v3110_v45, 2  ;;  %v3111_v37 = vmax.f32 %v3095_v15, 0.0 }
 0x398   : > { %v3157_v63 = vrot.slane %v3111_v37, 2  ;;  %v3156_v27 = vsel %vm2590_vm0, %v3153_v33, %v3155_v60 }
 0x399   : > { %v6142_v0 = vmax.f32 %v3109_v26, %v3156_v27 }
 0x39a   : > { %v3158_v8 = vsel %vm2590_vm0, %v3155_v60, %v3157_v63  ;;  %v3175_v28 = vsel %vm2590_vm0, %v3157_v63, 0.0  ;;  %vm3552_vm0 = vcmask 523264  }
 0x39b   : > { %v4473_v5 = vpack.i.bf16 %v6142_v0, %v6137_v38  ;;  %v6148_v14 = vmax.f32 %v3110_v45, %v3158_v8  ;;  %v6150_v47 = vmax.f32 %v3111_v37, %v3175_v28  ;;  %v3449_v8 = vld [vmem:[%s6213_s5] sm:$0xff] }
 0x39c   : > { %4215 = vmatprep.mubr.f32.mxu1 %v3449_v8 }
 0x39d   : > { %4474 = vrot.lane.b32.xlu0 %v4473_v5, %s4567_s15  ;;  %v4478_v55 = vpack.i.bf16 %v6150_v47, %v6148_v14 }
 0x39f   : > { %4479 = vrot.lane.b32.xlu1 %v4478_v55, %s4567_s15 }
 0x3df   : > { %v4445_v18 = vpop.permute.xlu0 %4444 }
 0x3e0   : > { %v4447_v3 = vunpack.i.h.bf16 %v4445_v18  ;;  %v4446_v43 = vunpack.i.l.bf16 %v4445_v18 }
 0x3e2   : > { %v3257_v62 = vsel %vm1753_vm1, %v4447_v3, 0.0  ;;  %v3256_v42 = vsel %vm1753_vm1, %v4446_v43, 0.0 }
 0x3e3   : > { %v3273_v11 = vmax.f32 %v6065_v30, %v3257_v62  ;;  %v3272_v10 = vmax.f32 %v6054_v32, %v3256_v42 }
 0x3e5   : > { %4159 = vmatprep.mubr.f32.mxu0 %v3272_v10 }
 0x3e6   : > { %4160 = vmatmul.mubr.f32.vlgmr.msra.gmra.mrb[32].mxu0 %v3273_v11 }
 0x3e7   : > { %v4450_v52 = vpop.permute.xlu1 %4449 }
 0x3e8   : > { %v4452_v36 = vunpack.i.h.bf16 %v4450_v52  ;;  %v4451_v57 = vunpack.i.l.bf16 %v4450_v52 }
 0x3ea   : > { %v3259_v6 = vsel %vm1753_vm1, %v4452_v36, 0.0  ;;  %v3258_v31 = vsel %vm1753_vm1, %v4451_v57, 0.0 }
 0x3eb   : > { %v3274_v53 = vmax.f32 %v6072_v7, %v3258_v31  ;;  %v3275_v24 = vmax.f32 %v6078_v22, %v3259_v6 }
 0x3ed   : > { %4162 = vmatprep.mubr.f32.mxu0 %v3274_v53 }
 0x3ee   : > { %4163 = vmatmul.mubr.f32.gmra.mrb[34].mxu0 %v3275_v24 }
 0x3ef   : > { %v4455_v54 = vpop.permute.xlu0 %4454 }
 0x3f0   : > { %v4457_v51 = vunpack.i.h.bf16 %v4455_v54  ;;  %v4456_v30 = vunpack.i.l.bf16 %v4455_v54 }
 0x3f2   : > { %v3261_v32 = vsel %vm1753_vm1, %v4457_v51, 0.0  ;;  %v3260_v9 = vsel %vm1753_vm1, %v4456_v30, 0.0 }
 0x3f3   : > { %v3276_v25 = vmax.f32 %v6085_v13, %v3260_v9  ;;  %v3277_v17 = vmax.f32 %v6091_v4, %v3261_v32  ;;  %v3450_v32 = vld [vmem:[%s6213_s5 + $0x8] sm:$0xff]  ;;  %v3451_v9 = vld [vmem:[%s6213_s5 + $0x10] sm:$0xff] }
 0x3f5   : > { %4165 = vmatprep.mubr.f32.mxu0 %v3276_v25  ;;  %v3452_v25 = vld [vmem:[%s6213_s5 + $0x18] sm:$0xff] }
 0x3f6   : > { %4166 = vmatmul.mubr.f32.gmra.mrb[36].mxu0 %v3277_v17 }
 0x3f7   : > { %v4460_v2 = vpop.permute.xlu1 %4459 }
 0x3f8   : > { %v4462_v58 = vunpack.i.h.bf16 %v4460_v2  ;;  %v4461_v7 = vunpack.i.l.bf16 %v4460_v2 }
 0x3fa   : > { %v3263_v22 = vsel %vm1753_vm1, %v4462_v58, 0.0  ;;  %v3262_v29 = vsel %vm1753_vm1, %v4461_v7, 0.0 }
 0x3fb   : > { %v3278_v40 = vmax.f32 %v6098_v48, %v3262_v29  ;;  %v3279_v12 = vmax.f32 %v6104_v61, %v3263_v22 }
 0x3fd   : > { %4168 = vmatprep.mubr.f32.mxu0 %v3278_v40 }
 0x3fe   : > { %4169 = vmatmul.mubr.f32.gmra.mrb[38].mxu0 %v3279_v12 }
 0x3ff   : > { %v4465_v41 = vpop.permute.xlu0 %4464 }
 0x400   : > { %v4467_v21 = vunpack.i.h.bf16 %v4465_v41  ;;  %v4466_v13 = vunpack.i.l.bf16 %v4465_v41 }
 0x402   : > { %v3265_v4 = vsel %vm1753_vm1, %v4467_v21, 0.0  ;;  %v3264_v26 = vsel %vm1753_vm1, %v4466_v13, 0.0 }
 0x403   : > { %v3280_v19 = vmax.f32 %v6111_v35, %v3264_v26  ;;  %v3281_v1 = vmax.f32 %v6117_v39, %v3265_v4 }
 0x405   : > { %4171 = vmatprep.mubr.f32.mxu0 %v3280_v19 }
 0x406   : > { %4172 = vmatmul.mubr.f32.gmra.mrb[40].mxu0 %v3281_v1 }
 0x407   : > { %v4470_v16 = vpop.permute.xlu1 %4469 }
 0x408   : > { %v4472_v33 = vunpack.i.h.bf16 %v4470_v16  ;;  %v4471_v48 = vunpack.i.l.bf16 %v4470_v16 }
 0x40a   : > { %v3267_v61 = vsel %vm1753_vm1, %v4472_v33, 0.0  ;;  %v3266_v56 = vsel %vm1753_vm1, %v4471_v48, 0.0 }
 0x40b   : > { %v3282_v34 = vmax.f32 %v6124_v23, %v3266_v56  ;;  %v3283_v20 = vmax.f32 %v6130_v50, %v3267_v61 }
 0x40d   : > { %4174 = vmatprep.mubr.f32.mxu0 %v3282_v34 }
 0x40e   : > { %4175 = vmatmul.mubr.f32.gmra.mrb[42].mxu0 %v3283_v20 }
 0x40f   : > { %v4475_v46 = vpop.permute.xlu0 %4474 }
 0x410   : > { %v4477_v49 = vunpack.i.h.bf16 %v4475_v46  ;;  %v4476_v35 = vunpack.i.l.bf16 %v4475_v46 }
 0x411   : > { %v4480_v44 = vpop.permute.xlu1 %4479 }
 0x412   : > { %v3269_v39 = vsel %vm1753_vm1, %v4477_v49, 0.0  ;;  %v3268_v59 = vsel %vm1753_vm1, %v4476_v35, 0.0  ;;  %v4482_v45 = vunpack.i.h.bf16 %v4480_v44  ;;  %v4481_v15 = vunpack.i.l.bf16 %v4480_v44 }
 0x413   : > { %v3284_v60 = vmax.f32 %v6137_v38, %v3268_v59  ;;  %v3285_v37 = vmax.f32 %v6142_v0, %v3269_v39 }
 0x414   : > { %v3270_v23 = vsel %vm1753_vm1, %v4481_v15, 0.0  ;;  %v3271_v50 = vsel %vm1753_vm1, %v4482_v45, 0.0  ;;  %vm3550_vm1 = vcmask 261120  }
 0x415   : > { %4177 = vmatprep.mubr.f32.mxu0 %v3284_v60  ;;  %v3286_v63 = vmax.f32 %v6148_v14, %v3270_v23  ;;  %v3287_v27 = vmax.f32 %v6150_v47, %v3271_v50 }
 0x416   : > { %4178 = vmatmul.mubr.f32.gmra.mrb[44].mxu0 %v3285_v37 }
 0x417   : > { %4180 = vmatprep.mubr.f32.mxu0 %v3286_v63 }
 0x41a   : > { %4181 = vmatmul.mubr.f32.gmra.mrb[46].mxu0 %v3287_v27 }
 0x4b9   : > { %v4161_v38 = vpop.f32.mrb[32].mxu0 }
 0x4ba   : > { %v3370_v28 = vpop.f32.mrb[33].mxu0 }
 0x4bb   : > { %v4253_v0 = vpack.c.bf16 %v4161_v38, %v3370_v28 }
 0x4bd   : > { %4254 = vmatprep.subr.bf16.mxu1 %v4253_v0 }
 0x4be   : > { %4256 = vmatpush3.bf16.msra.mxu1 %v4253_v0 }
 0x4c1   : > { %v4164_v5 = vpop.f32.mrb[34].mxu0 }
 0x4c2   : > { %v3380_v55 = vpop.f32.mrb[35].mxu0 }
 0x4c3   : > { %v4257_v18 = vpack.c.bf16 %v4164_v5, %v3380_v55 }
 0x4c5   : > { %4258 = vmatprep.subr.bf16.mxu1 %v4257_v18 }
 0x4c6   : > { %4260 = vmatpush3.bf16.msra.mxu1 %v4257_v18 }
 0x4c9   : > { %v4167_v14 = vpop.f32.mrb[36].mxu0 }
 0x4ca   : > { %v3390_v3 = vpop.f32.mrb[37].mxu0 }
 0x4cb   : > { %v4261_v43 = vpack.c.bf16 %v4167_v14, %v3390_v3 }
 0x4cd   : > { %4262 = vmatprep.subr.bf16.mxu1 %v4261_v43 }
 0x4ce   : > { %4264 = vmatpush3.bf16.msra.mxu1 %v4261_v43 }
 0x4d1   : > { %v4170_v47 = vpop.f32.mrb[38].mxu0 }
 0x4d2   : > { %v3400_v62 = vpop.f32.mrb[39].mxu0 }
 0x4d3   : > { %v4265_v42 = vpack.c.bf16 %v4170_v47, %v3400_v62 }
 0x4d5   : > { %4266 = vmatprep.subr.bf16.mxu1 %v4265_v42 }
 0x4d6   : > { %4268 = vmatpush3.bf16.msra.mxu1 %v4265_v42 }
 0x4d9   : > { %v4173_v11 = vpop.f32.mrb[40].mxu0 }
 0x4da   : > { %v3410_v10 = vpop.f32.mrb[41].mxu0 }
 0x4db   : > { %v4269_v52 = vpack.c.bf16 %v4173_v11, %v3410_v10 }
 0x4dd   : > { %4270 = vmatprep.subr.bf16.mxu1 %v4269_v52 }
 0x4de   : > { %4272 = vmatpush3.bf16.msra.mxu1 %v4269_v52 }
 0x4e1   : > { %v4176_v36 = vpop.f32.mrb[42].mxu0 }
 0x4e2   : > { %v3420_v57 = vpop.f32.mrb[43].mxu0 }
 0x4e3   : > { %v4273_v6 = vpack.c.bf16 %v4176_v36, %v3420_v57 }
 0x4e5   : > { %4274 = vmatprep.subr.bf16.mxu1 %v4273_v6 }
 0x4e6   : > { %4276 = vmatpush3.bf16.msra.mxu1 %v4273_v6 }
 0x4e9   : > { %v4179_v31 = vpop.f32.mrb[44].mxu0 }
 0x4ea   : > { %v3430_v53 = vpop.f32.mrb[45].mxu0 }
 0x4eb   : > { %v4277_v24 = vpack.c.bf16 %v4179_v31, %v3430_v53 }
 0x4ed   : > { %v4182_v54 = vpop.f32.mrb[46].mxu0  ;;  %4278 = vmatprep.subr.bf16.mxu1 %v4277_v24 }
 0x4ee   : > { %v3440_v51 = vpop.f32.mrb[47].mxu0  ;;  %4280 = vmatpush3.bf16.msra.mxu1 %v4277_v24 }
 0x4ef   : > { %v4281_v30 = vpack.c.bf16 %v4182_v54, %v3440_v51 }
 0x4f1   : > { %4282 = vmatprep.subr.bf16.mxu1 %v4281_v30 }
 0x4f2   : > { %4284 = vmatpush3.bf16.msra.mxu1 %v4281_v30 }
 0x4f5   : > { %4216 = vmatmul.mubr.f32.vlgmr.msra.gmra.mrb[96].mxu1 %v3450_v32 }
 0x4f6   : > { %4218 = vmatprep.mubr.f32.mxu1 %v3451_v9 }
 0x4f9   : > { %4219 = vmatmul.mubr.f32.gmra.mrb[98].mxu1 %v3452_v25 }
 0x5c8   : > { %v4217_v17 = vpop.f32.mrb[96].mxu1 }
 0x5c9   : > { %3539 = vrot.lane.b32.xlu0 %v4217_v17, %s4569_s21  ;;  %v3519_v2 = vpop.f32.mrb[97].mxu1 }
 0x5cc   : > { %v4220_v58 = vpop.f32.mrb[98].mxu1 }
 0x5cd   : > { %v3529_v7 = vpop.f32.mrb[99].mxu1  ;;  %3547 = vrot.lane.b32.xlu0 %v4220_v58, %s4570_s22 }
 0x5ce   : > { %3543 = vrot.lane.b32.xlu1 %v3529_v7, %s4571_s23 }
 0x63b   : > { %v3540_v22 = vpop.permute.xlu0 %3539 }
 0x63c   : > { %v3551_v29 = vsel %vm3550_vm1, %v3519_v2, %v3540_v22 }
 0x63f   : > { %v3548_v41 = vpop.permute.xlu0 %3547 }
 0x640   : > { %v3544_v40 = vpop.permute.xlu1 %3543 }
 0x641   : > { %v3553_v12 = vsel %vm3552_vm0, %v3551_v29, %v3544_v40 }
 0x642   : > { %v3555_v21 = vsel %vm3554_vm7, %v3553_v12, %v3548_v41 }
 0x643   : > { %3556 = vst [vmem:[%s278_s29] sm:$0xff] %v3555_v21 }
 0x644 PF: > { %s17_s24 = sadd.s32 1, %s4564_s24  }
 0x645   : > { %p14_p5 = scmp.ge.s32.totalorder %s17_s24, 4  }
 0x647   :  { %16 = sbr.rel (!%p14_p5) target bundleno = 1 (0x1), region = 82 }

</bundles_post_ra>
